<compile_context>
chip_gen: v7x
topology: tpu7x:2x2x1
jax: 0.10.0
libtpu: 0.0.40
codegen_flags: <defaults>
</compile_context>

<pallas_src>
import math

import jax
import jax.numpy as jnp
from jax.experimental import pallas as pl
from jax.experimental.pallas import tpu as pltpu


# ----------------------------- Pallas kernel -------------------------------
def _qlinear_kernel(x_ref, w4_ref, b_ref, o_ref, wfull_ref):
    """One (TM, K) row tile of x -> one (TM, N) row tile of y.

    wfull_ref is a persistent bf16 VMEM scratch holding the signed Hamilton
    weight W_full (K, N); it is built once at the first grid step and reused
    by every subsequent row tile.
    """
    in_q = w4_ref.shape[1]
    out_q = w4_ref.shape[2]

    @pl.when(pl.program_id(0) == 0)
    def _build_signed_weight():
        r = w4_ref[0]
        i = w4_ref[1]
        j = w4_ref[2]
        k = w4_ref[3]
        # W_full block layout (matches QuaternionLinearFunction exactly):
        #   [[ r,  i,  j,  k],
        #    [-i,  r,  k, -j],
        #    [-j, -k,  r,  i],
        #    [-k,  j, -i,  r]]
        rows = ((r, i, j, k),
                (-i, r, k, -j),
                (-j, -k, r, i),
                (-k, j, -i, r))
        for rb, row in enumerate(rows):          # 16 one-off VMEM block stores
            for cb, blk in enumerate(row):
                wfull_ref[rb * in_q:(rb + 1) * in_q,
                          cb * out_q:(cb + 1) * out_q] = blk

    x = x_ref[...]
    if x.dtype != jnp.bfloat16:                  # cheap in-kernel VPU cast;
        x = x.astype(jnp.bfloat16)               # bf16 callers skip it entirely
    y = jnp.dot(x, wfull_ref[...], preferred_element_type=jnp.float32)
    o_ref[...] = (y + b_ref[...]).astype(o_ref.dtype)


# ------------------------------ tiling helpers ------------------------------
def _round_up(x, m):
    return ((x + m - 1) // m) * m


def _choose_row_tile(M, K, N, budget_bytes=32 * 1024 * 1024):
    """Pick TM from a VMEM budget (bytes, worst-case f32 x input):

    resident:  2 * K*N/2   stacked raw bf16 weights (double-buffered by default)
               2 * K*N     signed bf16 W_full scratch  -> wait, K*N elems * 2B
               8 * N       bias (f32, double-buffered)
    per row:   8*K  (f32 x, 2 bufs) + 2*K (in-kernel bf16 copy)
               8*N  (f32 out, 2 bufs) + 4*N (f32 dot temp)
    Returns None if the resident weights cannot reasonably fit (caller falls
    back to an XLA GEMM).
    """
    fixed = 3 * K * N + 8 * N          # K*N (raw, 2 bufs) + 2*K*N (scratch)
    per_row = 10 * K + 12 * N
    avail = budget_bytes - fixed
    if avail < 16 * per_row:
        return None                    # weights too large to keep resident
    tm = min(avail // per_row, 512)
    # Enough grid steps for the BlockSpec pipeline to overlap x/out DMA with
    # the matmul, without shrinking tiles so far that the ~0.35us per-step
    # overhead dominates.
    for steps, floor in ((8, 256), (4, 128), (2, 64)):
        cand = _round_up(max(1, -(-M // steps)), 16)
        if cand >= floor:
            tm = min(tm, cand)
            break
    tm = max(16, min(tm, _round_up(M, 16)))
    return (tm // 16) * 16             # bf16-friendly sublane multiple


# Below this many MACs the per-grid-step Pallas overhead dominates; let XLA
# handle the GEMM directly.
_PALLAS_MIN_WORK = 1 << 20


def build_hamilton_matrix(r_w, i_w, j_w, k_w):
    """Reference / fallback: W_full exactly as the PyTorch autograd function."""
    col_r = jnp.concatenate([r_w, -i_w, -j_w, -k_w], axis=0)
    col_i = jnp.concatenate([i_w, r_w, -k_w, j_w], axis=0)
    col_j = jnp.concatenate([j_w, k_w, r_w, -i_w], axis=0)
    col_k = jnp.concatenate([k_w, -j_w, i_w, r_w], axis=0)
    return jnp.concatenate([col_r, col_i, col_j, col_k], axis=1)


# ------------------------------- 2D wrapper ---------------------------------
def quaternion_linear_2d(x2d, r_w, i_w, j_w, k_w, bias):
    """y = x2d @ W_full(r,i,j,k) + bias, rows tiled over a 1-D Pallas grid."""
    M, K = x2d.shape
    in_q, out_q = r_w.shape
    N = 4 * out_q
    assert K == 4 * in_q, "input feature dim must equal 4 * in_q"

    tm = _choose_row_tile(M, K, N)
    if M * K * N < _PALLAS_MIN_WORK or tm is None:
        # Tiny problem, or weights too large for a resident VMEM copy.
        # TODO(synk): K-axis reduction grid with f32 accumulator scratch for
        #             very large in_q instead of this XLA fallback.
        w_full = build_hamilton_matrix(r_w, i_w, j_w, k_w)
        return (x2d @ w_full + bias).astype(x2d.dtype)

    out_dtype = x2d.dtype
    # Raw components: one stacked bf16 input, DMA'd once (constant index map).
    w4 = jnp.stack([r_w, i_w, j_w, k_w]).astype(jnp.bfloat16)   # (4, in_q, out_q)
    b2d = bias.reshape(1, N).astype(jnp.float32)

    grid_m = pl.cdiv(M, tm)   # ragged final block is masked by Pallas; no jnp.pad copy

    out = pl.pallas_call(
        _qlinear_kernel,
        out_shape=jax.ShapeDtypeStruct((M, N), out_dtype),
        grid=(grid_m,),
        in_specs=[
            pl.BlockSpec((tm, K), lambda m: (m, 0)),               # x row tile
            pl.BlockSpec((4, in_q, out_q), lambda m: (0, 0, 0)),   # raw weights (once)
            pl.BlockSpec((1, N), lambda m: (0, 0)),                # bias (once)
        ],
        out_specs=pl.BlockSpec((tm, N), lambda m: (m, 0)),         # lane-dense store
        scratch_shapes=[pltpu.VMEM((K, N), jnp.bfloat16)],          # signed W_full
        compiler_params=pltpu.CompilerParams(
            # "arbitrary", not "parallel": the W_full scratch is built only at
            # program_id(0)==0; a parallel split on a multi-TC chip would leave
            # the second core's scratch uninitialized.  Equivalent to
            # "parallel" on single-TC v5e/v6e.
            dimension_semantics=("arbitrary",),
            vmem_limit_bytes=48 * 1024 * 1024,
        ),
    )(x2d, w4, b2d)
    return out


# --------------------------- module-level wrapper ----------------------------
def make_quaternion_linear_params(in_features, out_features, key):
    """Deterministic synthetic init matching QuaternionLinear parameter shapes.
    Bias is zero-filled (as reset_parameters does)."""
    in_q = in_features // 4
    out_q = out_features // 4
    s = 1.0 / math.sqrt(2.0 * (in_q + out_q))   # 'he' criterion scale
    kr, ki, kj, kk = jax.random.split(key, 4)
    r_w = jax.random.uniform(kr, (in_q, out_q), jnp.float32, -s, s)
    i_w = jax.random.uniform(ki, (in_q, out_q), jnp.float32, -s, s)
    j_w = jax.random.uniform(kj, (in_q, out_q), jnp.float32, -s, s)
    k_w = jax.random.uniform(kk, (in_q, out_q), jnp.float32, -s, s)
    # TODO(synk): exact numpy quaternion_init (polar/axis RandomState
    # construction) not reproduced; deterministic he-scaled uniform used.
    bias = jnp.zeros((4 * out_q,), jnp.float32)
    return r_w, i_w, j_w, k_w, bias


def quaternion_linear_forward(x, r_w, i_w, j_w, k_w, bias):
    """Matches QuaternionLinear.forward for 2D or 3D input."""
    if x.ndim == 3:
        T, N, C = x.shape
        y2d = quaternion_linear_2d(x.reshape(T * N, C), r_w, i_w, j_w, k_w, bias)
        return y2d.reshape(T, N, y2d.shape[1])
    elif x.ndim == 2:
        return quaternion_linear_2d(x, r_w, i_w, j_w, k_w, bias)
    else:
        raise NotImplementedError


# ----------------------------------- main ------------------------------------
if __name__ == "__main__":
    key = jax.random.PRNGKey(0)
    kx, kparam = jax.random.split(key)

    # Modest lane-dense config: in_q = out_q = 128 -> C = N = 512, M = T*B = 256
    # rows -> two 128-row tiles (weight scratch built at step 0, reused at
    # step 1; full-width 512-lane MXU matmul and dense output stores).
    in_features, out_features = 512, 512
    T, B = 4, 64

    x = jax.random.normal(kx, (T, B, in_features), jnp.float32)
    r_w, i_w, j_w, k_w, bias = make_quaternion_linear_params(
        in_features, out_features, kparam)

    fwd = jax.jit(quaternion_linear_forward)
    y = jax.block_until_ready(fwd(x, r_w, i_w, j_w, k_w, bias))
    assert y.shape == (T, B, out_features)

    # Pure-JAX references: the exact block-Hamilton-matrix formulation of the
    # original PyTorch autograd function.
    w_full = build_hamilton_matrix(r_w, i_w, j_w, k_w)
    x2d = x.reshape(T * B, in_features)

    # (a) Same numerics as the kernel (bf16 operands, f32 accumulation).
    y_ref_bf16 = (jnp.dot(x2d.astype(jnp.bfloat16), w_full.astype(jnp.bfloat16),
                          preferred_element_type=jnp.float32)
                  + bias).reshape(T, B, out_features)
    assert jnp.allclose(y, y_ref_bf16, atol=2e-3, rtol=2e-3), (
        float(jnp.max(jnp.abs(y - y_ref_bf16))))

    # (b) Full-f32 reference; looser tolerance documents the deliberate bf16
    #     MXU path (f32-accumulated).
    y_ref_f32 = (jnp.dot(x2d, w_full, precision=jax.lax.Precision.HIGHEST)
                 + bias).reshape(T, B, out_features)
    assert jnp.allclose(y, y_ref_f32, atol=5e-2, rtol=5e-2), (
        float(jnp.max(jnp.abs(y - y_ref_f32))))

    print("KERNEL_OK")
</pallas_src>

<mosaic_0001>
module attributes {stable_mosaic.version = 11 : i64} {
  func.func @_qlinear_kernel(%arg0: i32, %arg1: memref<128x512xf32, #tpu.memory_space<vmem>>, %arg2: memref<4x128x128xbf16, #tpu.memory_space<vmem>>, %arg3: memref<1x512xf32, #tpu.memory_space<vmem>>, %arg4: memref<128x512xf32, #tpu.memory_space<vmem>>, %arg5: memref<512x512xbf16, #tpu.memory_space<vmem>>) attributes {dimension_semantics = [#tpu.dimension_semantics<arbitrary>], iteration_bounds = array<i64: 2>, scalar_prefetch = 0 : i64, scratch_operands = 1 : i64, tpu.core_type = #tpu.core_type<tc>, window_params = [{transform_indices = @transform_0, window_bounds = array<i64: 128, 512>}, {pipeline_mode = #tpu.pipeline_mode<synchronous>, transform_indices = @transform_1, window_bounds = array<i64: 4, 128, 128>}, {pipeline_mode = #tpu.pipeline_mode<synchronous>, transform_indices = @transform_2, window_bounds = array<i64: 1, 512>}, {transform_indices = @transform_3, window_bounds = array<i64: 128, 512>}]} {
    %c0_i32 = arith.constant 0 : i32
    %0 = arith.cmpi eq, %arg0, %c0_i32 : i32
    %1 = arith.extui %0 : i1 to i32
    %c0_i32_0 = arith.constant 0 : i32
    %2 = arith.cmpi ne, %1, %c0_i32_0 : i32
    scf.if %2 {
      %c0_8 = arith.constant 0 : index
      %c0_9 = arith.constant 0 : index
      %c0_10 = arith.constant 0 : index
      %11 = vector.load %arg2[%c0_8, %c0_9, %c0_10] : memref<4x128x128xbf16, #tpu.memory_space<vmem>>, vector<1x128x128xbf16>
      %12 = vector.shape_cast %11 : vector<1x128x128xbf16> to vector<128x128xbf16>
      %c1 = arith.constant 1 : index
      %c0_11 = arith.constant 0 : index
      %c0_12 = arith.constant 0 : index
      %13 = vector.load %arg2[%c1, %c0_11, %c0_12] : memref<4x128x128xbf16, #tpu.memory_space<vmem>>, vector<1x128x128xbf16>
      %14 = vector.shape_cast %13 : vector<1x128x128xbf16> to vector<128x128xbf16>
      %c2 = arith.constant 2 : index
      %c0_13 = arith.constant 0 : index
      %c0_14 = arith.constant 0 : index
      %15 = vector.load %arg2[%c2, %c0_13, %c0_14] : memref<4x128x128xbf16, #tpu.memory_space<vmem>>, vector<1x128x128xbf16>
      %16 = vector.shape_cast %15 : vector<1x128x128xbf16> to vector<128x128xbf16>
      %c3 = arith.constant 3 : index
      %c0_15 = arith.constant 0 : index
      %c0_16 = arith.constant 0 : index
      %17 = vector.load %arg2[%c3, %c0_15, %c0_16] : memref<4x128x128xbf16, #tpu.memory_space<vmem>>, vector<1x128x128xbf16>
      %18 = vector.shape_cast %17 : vector<1x128x128xbf16> to vector<128x128xbf16>
      %cst_17 = arith.constant 0.000000e+00 : bf16
      %19 = vector.broadcast %cst_17 : bf16 to vector<128x128xbf16>
      %20 = arith.subf %19, %14 : vector<128x128xbf16>
      %cst_18 = arith.constant 0.000000e+00 : bf16
      %21 = vector.broadcast %cst_18 : bf16 to vector<128x128xbf16>
      %22 = arith.subf %21, %16 : vector<128x128xbf16>
      %cst_19 = arith.constant 0.000000e+00 : bf16
      %23 = vector.broadcast %cst_19 : bf16 to vector<128x128xbf16>
      %24 = arith.subf %23, %16 : vector<128x128xbf16>
      %cst_20 = arith.constant 0.000000e+00 : bf16
      %25 = vector.broadcast %cst_20 : bf16 to vector<128x128xbf16>
      %26 = arith.subf %25, %18 : vector<128x128xbf16>
      %cst_21 = arith.constant 0.000000e+00 : bf16
      %27 = vector.broadcast %cst_21 : bf16 to vector<128x128xbf16>
      %28 = arith.subf %27, %18 : vector<128x128xbf16>
      %cst_22 = arith.constant 0.000000e+00 : bf16
      %29 = vector.broadcast %cst_22 : bf16 to vector<128x128xbf16>
      %30 = arith.subf %29, %14 : vector<128x128xbf16>
      %c0_23 = arith.constant 0 : index
      %c0_24 = arith.constant 0 : index
      %31 = vector.load %arg5[%c0_23, %c0_24] : memref<512x512xbf16, #tpu.memory_space<vmem>>, vector<128x128xbf16>
      tpu.vector_store %arg5[%c0_23, %c0_24], %12 {strides = array<i32>} : memref<512x512xbf16, #tpu.memory_space<vmem>>, vector<128x128xbf16>,
      %c0_25 = arith.constant 0 : index
      %c128 = arith.constant 128 : index
      %32 = vector.load %arg5[%c0_25, %c128] : memref<512x512xbf16, #tpu.memory_space<vmem>>, vector<128x128xbf16>
      tpu.vector_store %arg5[%c0_25, %c128], %14 {strides = array<i32>} : memref<512x512xbf16, #tpu.memory_space<vmem>>, vector<128x128xbf16>,
      %c0_26 = arith.constant 0 : index
      %c256 = arith.constant 256 : index
      %33 = vector.load %arg5[%c0_26, %c256] : memref<512x512xbf16, #tpu.memory_space<vmem>>, vector<128x128xbf16>
      tpu.vector_store %arg5[%c0_26, %c256], %16 {strides = array<i32>} : memref<512x512xbf16, #tpu.memory_space<vmem>>, vector<128x128xbf16>,
      %c0_27 = arith.constant 0 : index
      %c384 = arith.constant 384 : index
      %34 = vector.load %arg5[%c0_27, %c384] : memref<512x512xbf16, #tpu.memory_space<vmem>>, vector<128x128xbf16>
      tpu.vector_store %arg5[%c0_27, %c384], %18 {strides = array<i32>} : memref<512x512xbf16, #tpu.memory_space<vmem>>, vector<128x128xbf16>,
      %c128_28 = arith.constant 128 : index
      %c0_29 = arith.constant 0 : index
      %35 = vector.load %arg5[%c128_28, %c0_29] : memref<512x512xbf16, #tpu.memory_space<vmem>>, vector<128x128xbf16>
      tpu.vector_store %arg5[%c128_28, %c0_29], %20 {strides = array<i32>} : memref<512x512xbf16, #tpu.memory_space<vmem>>, vector<128x128xbf16>,
      %c128_30 = arith.constant 128 : index
      %c128_31 = arith.constant 128 : index
      %36 = vector.load %arg5[%c128_30, %c128_31] : memref<512x512xbf16, #tpu.memory_space<vmem>>, vector<128x128xbf16>
      tpu.vector_store %arg5[%c128_30, %c128_31], %12 {strides = array<i32>} : memref<512x512xbf16, #tpu.memory_space<vmem>>, vector<128x128xbf16>,
      %c128_32 = arith.constant 128 : index
      %c256_33 = arith.constant 256 : index
      %37 = vector.load %arg5[%c128_32, %c256_33] : memref<512x512xbf16, #tpu.memory_space<vmem>>, vector<128x128xbf16>
      tpu.vector_store %arg5[%c128_32, %c256_33], %18 {strides = array<i32>} : memref<512x512xbf16, #tpu.memory_space<vmem>>, vector<128x128xbf16>,
      %c128_34 = arith.constant 128 : index
      %c384_35 = arith.constant 384 : index
      %38 = vector.load %arg5[%c128_34, %c384_35] : memref<512x512xbf16, #tpu.memory_space<vmem>>, vector<128x128xbf16>
      tpu.vector_store %arg5[%c128_34, %c384_35], %22 {strides = array<i32>} : memref<512x512xbf16, #tpu.memory_space<vmem>>, vector<128x128xbf16>,
      %c256_36 = arith.constant 256 : index
      %c0_37 = arith.constant 0 : index
      %39 = vector.load %arg5[%c256_36, %c0_37] : memref<512x512xbf16, #tpu.memory_space<vmem>>, vector<128x128xbf16>
      tpu.vector_store %arg5[%c256_36, %c0_37], %24 {strides = array<i32>} : memref<512x512xbf16, #tpu.memory_space<vmem>>, vector<128x128xbf16>,
      %c256_38 = arith.constant 256 : index
      %c128_39 = arith.constant 128 : index
      %40 = vector.load %arg5[%c256_38, %c128_39] : memref<512x512xbf16, #tpu.memory_space<vmem>>, vector<128x128xbf16>
      tpu.vector_store %arg5[%c256_38, %c128_39], %26 {strides = array<i32>} : memref<512x512xbf16, #tpu.memory_space<vmem>>, vector<128x128xbf16>,
      %c256_40 = arith.constant 256 : index
      %c256_41 = arith.constant 256 : index
      %41 = vector.load %arg5[%c256_40, %c256_41] : memref<512x512xbf16, #tpu.memory_space<vmem>>, vector<128x128xbf16>
      tpu.vector_store %arg5[%c256_40, %c256_41], %12 {strides = array<i32>} : memref<512x512xbf16, #tpu.memory_space<vmem>>, vector<128x128xbf16>,
      %c256_42 = arith.constant 256 : index
      %c384_43 = arith.constant 384 : index
      %42 = vector.load %arg5[%c256_42, %c384_43] : memref<512x512xbf16, #tpu.memory_space<vmem>>, vector<128x128xbf16>
      tpu.vector_store %arg5[%c256_42, %c384_43], %14 {strides = array<i32>} : memref<512x512xbf16, #tpu.memory_space<vmem>>, vector<128x128xbf16>,
      %c384_44 = arith.constant 384 : index
      %c0_45 = arith.constant 0 : index
      %43 = vector.load %arg5[%c384_44, %c0_45] : memref<512x512xbf16, #tpu.memory_space<vmem>>, vector<128x128xbf16>
      tpu.vector_store %arg5[%c384_44, %c0_45], %28 {strides = array<i32>} : memref<512x512xbf16, #tpu.memory_space<vmem>>, vector<128x128xbf16>,
      %c384_46 = arith.constant 384 : index
      %c128_47 = arith.constant 128 : index
      %44 = vector.load %arg5[%c384_46, %c128_47] : memref<512x512xbf16, #tpu.memory_space<vmem>>, vector<128x128xbf16>
      tpu.vector_store %arg5[%c384_46, %c128_47], %16 {strides = array<i32>} : memref<512x512xbf16, #tpu.memory_space<vmem>>, vector<128x128xbf16>,
      %c384_48 = arith.constant 384 : index
      %c256_49 = arith.constant 256 : index
      %45 = vector.load %arg5[%c384_48, %c256_49] : memref<512x512xbf16, #tpu.memory_space<vmem>>, vector<128x128xbf16>
      tpu.vector_store %arg5[%c384_48, %c256_49], %30 {strides = array<i32>} : memref<512x512xbf16, #tpu.memory_space<vmem>>, vector<128x128xbf16>,
      %c384_50 = arith.constant 384 : index
      %c384_51 = arith.constant 384 : index
      %46 = vector.load %arg5[%c384_50, %c384_51] : memref<512x512xbf16, #tpu.memory_space<vmem>>, vector<128x128xbf16>
      tpu.vector_store %arg5[%c384_50, %c384_51], %12 {strides = array<i32>} : memref<512x512xbf16, #tpu.memory_space<vmem>>, vector<128x128xbf16>,
    } else {
    }
    %c0 = arith.constant 0 : index
    %c0_1 = arith.constant 0 : index
    %3 = vector.load %arg1[%c0, %c0_1] : memref<128x512xf32, #tpu.memory_space<vmem>>, vector<128x512xf32>
    %4 = arith.truncf %3 : vector<128x512xf32> to vector<128x512xbf16>
    %c0_2 = arith.constant 0 : index
    %c0_3 = arith.constant 0 : index
    %5 = vector.load %arg5[%c0_2, %c0_3] : memref<512x512xbf16, #tpu.memory_space<vmem>>, vector<512x512xbf16>
    %cst = arith.constant dense<0.000000e+00> : vector<128x512xf32>
    %6 = tpu.matmul %4, %5, %cst {dimension_numbers = #tpu.dot_dimension_numbers<[1], [0], [0], [1], [0, 0, 1, 1], [], []>} : vector<128x512xbf16>, vector<512x512xbf16>, vector<128x512xf32> -> vector<128x512xf32>
    %c0_4 = arith.constant 0 : index
    %c0_5 = arith.constant 0 : index
    %7 = vector.load %arg3[%c0_4, %c0_5] : memref<1x512xf32, #tpu.memory_space<vmem>>, vector<1x512xf32>
    %8 = vector.broadcast %7 : vector<1x512xf32> to vector<128x512xf32>
    %9 = arith.addf %6, %8 : vector<128x512xf32>
    %c0_6 = arith.constant 0 : index
    %c0_7 = arith.constant 0 : index
    %10 = vector.load %arg4[%c0_6, %c0_7] : memref<128x512xf32, #tpu.memory_space<vmem>>, vector<128x512xf32>
    tpu.vector_store %arg4[%c0_6, %c0_7], %9 {strides = array<i32>} : memref<128x512xf32, #tpu.memory_space<vmem>>, vector<128x512xf32>,
    return
  }
  func.func @transform_0(%arg0: i32) -> (i32, i32) {
    %c0_i32 = arith.constant 0 : i32
    %c0_i32_0 = arith.constant 0 : i32
    return %arg0, %c0_i32 : i32, i32
  }
  func.func @transform_1(%arg0: i32) -> (i32, i32, i32) {
    %c0_i32 = arith.constant 0 : i32
    %c0_i32_0 = arith.constant 0 : i32
    %c0_i32_1 = arith.constant 0 : i32
    %c0_i32_2 = arith.constant 0 : i32
    return %c0_i32, %c0_i32_0, %c0_i32_1 : i32, i32, i32
  }
  func.func @transform_2(%arg0: i32) -> (i32, i32) {
    %c0_i32 = arith.constant 0 : i32
    %c0_i32_0 = arith.constant 0 : i32
    %c0_i32_1 = arith.constant 0 : i32
    return %c0_i32, %c0_i32_0 : i32, i32
  }
  func.func @transform_3(%arg0: i32) -> (i32, i32) {
    %c0_i32 = arith.constant 0 : i32
    %c0_i32_0 = arith.constant 0 : i32
    return %arg0, %c0_i32 : i32, i32
  }
}

</mosaic_0001>

<bundles_post_ra>
// kernel: quaternion_linear_forward.1
= control target key start
LH: loop header
LB: loop body
LE: loop exit
PB: predicated region body
PF: predicated region fallthrough
CT: control target
= control target key end

     0   :  { %8 = vsyncpa [#allocation4], 0  ;;  %s2683_s0 = inlined_call_operand.vmem [shape: f32[256,512], index: 0, kind: input, shape index: {}]   ;;  %s2684_s1 = inlined_call_operand.vmem [shape: bf16[4,128,128], index: 1, kind: input, shape index: {}]   ;;  %s2685_s2 = inlined_call_operand.vmem [shape: f32[1,512], index: 2, kind: input, shape index: {}]   ;;  %s2686_s3 = inlined_call_operand.hbm [shape: f32[256,512], index: 3, kind: output, shape index: {}]  }
   0x1   :  { %10 = vsyncpa [#allocation4 + $0x1], 0  ;;  %s2008_s12 = smov 0   ;;  %s2010_s13 = smov 0  }
   0x2   :  { %s2012_s14 = smov 0   ;;  %s2014_s15 = smov 0  }
   0x3 LB: > { %s2029_s16 = sadd.s32 4294967295, %s1983_s15   ;;  %s1598_s17 = sadd.s32 4294967294, %s1983_s15   ;;  %s1983_s15 = sphi %s2014_s15, %s2692_s15   ;;  %s1979_s14 = sphi %s2012_s14, %s2691_s14   ;;  %s1975_s13 = sphi %s2010_s13, %s2690_s13   ;;  %s1971_s12 = sphi %s2008_s12, %s2689_s12  }
   0x4   : > { %s2033_s18 = sadd.s32 1, %s1983_s15   ;;  %s91_s19 = sadd.s32 1, %s1979_s14 }
   0x5   : > { %s88_s20 = ssub.s32 %s1983_s15, %s2033_s18  ;;  %p101_p0 = scmp.ne.s32.totalorder %s1979_s14, %s1975_s13 }
   0x6   : > { %p89_p1 = scmp.eq.s32.totalorder %s88_s20, 0  ;;  %p102_p2 = scmp.eq.s32.totalorder %s2029_s16, 1 }
   0x7   : > { %p107_p3 = scmp.ne.s32.totalorder %s1975_s13, %s1971_s12  ;;  %p108_p4 = scmp.eq.s32.totalorder %s1598_s17, 1 }
   0x8   : > { %s2044_s21 = scalar_select %p89_p1, %s1979_s14, %s91_s19  }
   0x9   : > { %p2046_p5 = por %p102_p2, %p101_p0  ;;  %p2050_p6 = por %p108_p4, %p107_p3 }
   0xa   : > { %p1601_p7 = scmp.ge.s32.totalorder %s1983_s15, 1  ;;  %p142_p8 = scmp.lt.s32.totalorder %s1983_s15, 3 }
   0xc   : > { %p143_p9 = pnand %p1601_p7, %p142_p8 }
   0xd   : > { %s164_s24 = sand.u32 (!%p143_p9), 1, %s1975_s13   ;;  %s1603_s25 = sshll.u32 (!%p143_p9), %s2029_s16, 4 }
   0xe   : > { %146 = sbr.rel (%p143_p9) target bundleno = 505 (0x1f9), region = 32  ;;  %s1602_s26 = sshll.u32 (!%p143_p9), %s164_s24, 9 }
   0xf   : > { %p168_p10 = scmp.lt.s32.totalorder (!%p143_p9), %s1603_s25, 31  ;;  %s2065_s4 = scalar_lea.vmem (!%p143_p9), [#allocation3], %s1602_s26 }
  0x10   : > { %p1606_p11 = scmp.ne.s32.totalorder (!%p143_p9), %s2029_s16, 0 }
  0x15   : > { %s2694_s25 = smov (!%p168_p10, %s1603_s25), 31  ;;  %179 = sbr.rel (%p1606_p11) target bundleno = 87 (0x57), region = 36 }
  0x16   : > { %s1717_s27 = sshll.u32 %s2694_s25, 5  ;;  %v1889_v0 = vld [vmem:[%s2684_s1] sm:$0xff] (!%p1606_p11)   ;;  %v1890_v1 = vld [vmem:[%s2684_s1 + $0x8] sm:$0xff] (!%p1606_p11)   ;;  %v1891_v2 = vld [vmem:[%s2684_s1 + $0x10] sm:$0xff] (!%p1606_p11)  }
  0x17   : > { %s2063_s30 = scalar_lea.vmem %s2683_s0, %s1717_s27  ;;  %343 = vst [vmem:[#allocation2] sm:$0xff] (!%p1606_p11), %v1889_v0  ;;  %575 = vst [vmem:[#allocation2 + $0x108] sm:$0xff] (!%p1606_p11), %v1889_v0  ;;  %v1892_v3 = vld [vmem:[%s2684_s1 + $0x18] sm:$0xff] (!%p1606_p11)   ;;  %v1893_v4 = vld [vmem:[%s2684_s1 + $0x20] sm:$0xff] (!%p1606_p11)  }
  0x18   : > { %711 = vst [vmem:[#allocation2 + $0x210] sm:$0xff] (!%p1606_p11), %v1889_v0  ;;  %751 = vst [vmem:[#allocation2 + $0x318] sm:$0xff] (!%p1606_p11), %v1889_v0  ;;  %v1894_v5 = vld [vmem:[%s2684_s1 + $0x28] sm:$0xff] (!%p1606_p11)   ;;  %v1895_v6 = vld [vmem:[%s2684_s1 + $0x30] sm:$0xff] (!%p1606_p11)  }
  0x19   : > { %344 = vst [vmem:[#allocation2 + $0x20] sm:$0xff] (!%p1606_p11), %v1890_v1  ;;  %576 = vst [vmem:[#allocation2 + $0x128] sm:$0xff] (!%p1606_p11), %v1890_v1  ;;  %v1896_v7 = vld [vmem:[%s2684_s1 + $0x38] sm:$0xff] (!%p1606_p11)   ;;  %v2095_v8 = vld [vmem:[%s2684_s1 + $0x40] sm:$0xf] (!%p1606_p11) }
  0x1a   : > { %712 = vst [vmem:[#allocation2 + $0x230] sm:$0xff] (!%p1606_p11), %v1890_v1  ;;  %752 = vst [vmem:[#allocation2 + $0x338] sm:$0xff] (!%p1606_p11), %v1890_v1  ;;  %v2100_v9 = vld [vmem:[%s2684_s1 + $0x44] sm:$0xf] (!%p1606_p11)  ;;  %v2105_v10 = vld [vmem:[%s2684_s1 + $0x48] sm:$0xf] (!%p1606_p11) }
  0x1b   : > { %345 = vst [vmem:[#allocation2 + $0x40] sm:$0xff] (!%p1606_p11), %v1891_v2  ;;  %577 = vst [vmem:[#allocation2 + $0x148] sm:$0xff] (!%p1606_p11), %v1891_v2  ;;  %v1663_v11 = vcombine.low (!%p1606_p11), %v2095_v8, %v2100_v9  ;;  %v2112_v12 = vld [vmem:[%s2684_s1 + $0x4c] sm:$0xf] (!%p1606_p11)  ;;  %v2117_v13 = vld [vmem:[%s2684_s1 + $0x50] sm:$0xf] (!%p1606_p11) }
  0x1c   : > { %713 = vst [vmem:[#allocation2 + $0x250] sm:$0xff] %v1891_v2  ;;  %753 = vst [vmem:[#allocation2 + $0x358] sm:$0xff] %v1891_v2  ;;  %v2122_v14 = vld [vmem:[%s2684_s1 + $0x54] sm:$0xf]  ;;  %v1664_v15 = vcombine.low %v2105_v10, %v2112_v12  ;;  %v2131_v17 = vld [vmem:[%s2684_s1 + $0x58] sm:$0xf] }
  0x1d   : > { %346 = vst [vmem:[#allocation2 + $0x60] sm:$0xff] %v1892_v3  ;;  %578 = vst [vmem:[#allocation2 + $0x168] sm:$0xff] %v1892_v3  ;;  %v1665_v16 = vcombine.low %v2117_v13, %v2122_v14  ;;  %v2136_v18 = vld [vmem:[%s2684_s1 + $0x5c] sm:$0xf]  ;;  %v2141_v19 = vld [vmem:[%s2684_s1 + $0x60] sm:$0xf] }
  0x1e   : > { %714 = vst [vmem:[#allocation2 + $0x270] sm:$0xff] %v1892_v3  ;;  %754 = vst [vmem:[#allocation2 + $0x378] sm:$0xff] %v1892_v3  ;;  %v1666_v20 = vcombine.low %v2131_v17, %v2136_v18  ;;  %v2148_v21 = vld [vmem:[%s2684_s1 + $0x64] sm:$0xf]  ;;  %v2153_v22 = vld [vmem:[%s2684_s1 + $0x68] sm:$0xf] }
  0x1f   : > { %347 = vst [vmem:[#allocation2 + $0x80] sm:$0xff] %v1893_v4  ;;  %579 = vst [vmem:[#allocation2 + $0x188] sm:$0xff] %v1893_v4  ;;  %v2158_v23 = vld [vmem:[%s2684_s1 + $0x6c] sm:$0xf]  ;;  %v1667_v24 = vcombine.low %v2141_v19, %v2148_v21  ;;  %v2167_v26 = vld [vmem:[%s2684_s1 + $0x70] sm:$0xf] }
  0x20   : > { %715 = vst [vmem:[#allocation2 + $0x290] sm:$0xff] %v1893_v4  ;;  %755 = vst [vmem:[#allocation2 + $0x398] sm:$0xff] %v1893_v4  ;;  %v1668_v25 = vcombine.low %v2153_v22, %v2158_v23  ;;  %v2172_v27 = vld [vmem:[%s2684_s1 + $0x74] sm:$0xf]  ;;  %v2177_v28 = vld [vmem:[%s2684_s1 + $0x78] sm:$0xf] }
  0x21   : > { %348 = vst [vmem:[#allocation2 + $0xa0] sm:$0xff] %v1894_v5  ;;  %580 = vst [vmem:[#allocation2 + $0x1a8] sm:$0xff] %v1894_v5  ;;  %v1669_v29 = vcombine.low %v2167_v26, %v2172_v27  ;;  %v2184_v30 = vld [vmem:[%s2684_s1 + $0x7c] sm:$0xf]  ;;  %v2189_v31 = vld [vmem:[%s2684_s1 + $0x80] sm:$0xf] }
  0x22   : > { %716 = vst [vmem:[#allocation2 + $0x2b0] sm:$0xff] %v1894_v5  ;;  %756 = vst [vmem:[#allocation2 + $0x3b8] sm:$0xff] %v1894_v5  ;;  %v2194_v32 = vld [vmem:[%s2684_s1 + $0x84] sm:$0xf]  ;;  %v1670_v33 = vcombine.low %v2177_v28, %v2184_v30  ;;  %v2203_v35 = vld [vmem:[%s2684_s1 + $0x88] sm:$0xf] }
  0x23   : > { %349 = vst [vmem:[#allocation2 + $0xc0] sm:$0xff] %v1895_v6  ;;  %581 = vst [vmem:[#allocation2 + $0x1c8] sm:$0xff] %v1895_v6  ;;  %v1671_v34 = vcombine.low %v2189_v31, %v2194_v32  ;;  %v2208_v36 = vld [vmem:[%s2684_s1 + $0x8c] sm:$0xf]  ;;  %v2213_v37 = vld [vmem:[%s2684_s1 + $0x90] sm:$0xf] }
  0x24   : > { %717 = vst [vmem:[#allocation2 + $0x2d0] sm:$0xff] %v1895_v6  ;;  %757 = vst [vmem:[#allocation2 + $0x3d8] sm:$0xff] %v1895_v6  ;;  %v1672_v38 = vcombine.low %v2203_v35, %v2208_v36  ;;  %v2220_v39 = vld [vmem:[%s2684_s1 + $0x94] sm:$0xf]  ;;  %v2225_v40 = vld [vmem:[%s2684_s1 + $0x98] sm:$0xf] }
  0x25   : > { %350 = vst [vmem:[#allocation2 + $0xe0] sm:$0xff] %v1896_v7  ;;  %582 = vst [vmem:[#allocation2 + $0x1e8] sm:$0xff] %v1896_v7  ;;  %v2230_v41 = vld [vmem:[%s2684_s1 + $0x9c] sm:$0xf]  ;;  %v1673_v42 = vcombine.low %v2213_v37, %v2220_v39  ;;  %v2239_v44 = vld [vmem:[%s2684_s1 + $0xa0] sm:$0xf] }
  0x26   : > { %718 = vst [vmem:[#allocation2 + $0x2f0] sm:$0xff] %v1896_v7  ;;  %758 = vst [vmem:[#allocation2 + $0x3f8] sm:$0xff] %v1896_v7  ;;  %v1674_v43 = vcombine.low %v2225_v40, %v2230_v41  ;;  %v2244_v45 = vld [vmem:[%s2684_s1 + $0xa4] sm:$0xf]  ;;  %v2249_v46 = vld [vmem:[%s2684_s1 + $0xa8] sm:$0xf] }
  0x27   : > { %399 = vst [vmem:[#allocation2 + $0x8] sm:$0xff] %v1663_v11  ;;  %719 = vst [vmem:[#allocation2 + $0x218] sm:$0xff] %v1663_v11  ;;  %v1675_v47 = vcombine.low %v2239_v44, %v2244_v45  ;;  %v2256_v48 = vld [vmem:[%s2684_s1 + $0xac] sm:$0xf]  ;;  %v2261_v49 = vld [vmem:[%s2684_s1 + $0xb0] sm:$0xf] }
  0x28   : > { %400 = vst [vmem:[#allocation2 + $0x28] sm:$0xff] %v1664_v15  ;;  %720 = vst [vmem:[#allocation2 + $0x238] sm:$0xff] %v1664_v15  ;;  %v2266_v50 = vld [vmem:[%s2684_s1 + $0xb4] sm:$0xf]  ;;  %v1676_v51 = vcombine.low %v2249_v46, %v2256_v48  ;;  %v2275_v53 = vld [vmem:[%s2684_s1 + $0xb8] sm:$0xf] }
  0x29   : > { %401 = vst [vmem:[#allocation2 + $0x48] sm:$0xff] %v1665_v16  ;;  %721 = vst [vmem:[#allocation2 + $0x258] sm:$0xff] %v1665_v16  ;;  %v1677_v52 = vcombine.low %v2261_v49, %v2266_v50  ;;  %v2280_v54 = vld [vmem:[%s2684_s1 + $0xbc] sm:$0xf]  ;;  %v2285_v55 = vld [vmem:[%s2684_s1 + $0xc0] sm:$0xf] }
  0x2a   : > { %402 = vst [vmem:[#allocation2 + $0x68] sm:$0xff] %v1666_v20  ;;  %722 = vst [vmem:[#allocation2 + $0x278] sm:$0xff] %v1666_v20  ;;  %v1678_v56 = vcombine.low %v2275_v53, %v2280_v54  ;;  %v2292_v57 = vld [vmem:[%s2684_s1 + $0xc4] sm:$0xf]  ;;  %v2297_v58 = vld [vmem:[%s2684_s1 + $0xc8] sm:$0xf] }
  0x2b   : > { %403 = vst [vmem:[#allocation2 + $0x88] sm:$0xff] %v1667_v24  ;;  %723 = vst [vmem:[#allocation2 + $0x298] sm:$0xff] %v1667_v24  ;;  %v2302_v59 = vld [vmem:[%s2684_s1 + $0xcc] sm:$0xf]  ;;  %v1679_v60 = vcombine.low %v2285_v55, %v2292_v57  ;;  %v2311_v62 = vld [vmem:[%s2684_s1 + $0xd0] sm:$0xf] }
  0x2c   : > { %404 = vst [vmem:[#allocation2 + $0xa8] sm:$0xff] %v1668_v25  ;;  %724 = vst [vmem:[#allocation2 + $0x2b8] sm:$0xff] %v1668_v25  ;;  %v1680_v61 = vcombine.low %v2297_v58, %v2302_v59  ;;  %v2316_v63 = vld [vmem:[%s2684_s1 + $0xd4] sm:$0xf]  ;;  %v2321_v0 = vld [vmem:[%s2684_s1 + $0xd8] sm:$0xf] }
  0x2d   : > { %405 = vst [vmem:[#allocation2 + $0xc8] sm:$0xff] %v1669_v29  ;;  %725 = vst [vmem:[#allocation2 + $0x2d8] sm:$0xff] %v1669_v29  ;;  %v1681_v1 = vcombine.low %v2311_v62, %v2316_v63  ;;  %v2328_v2 = vld [vmem:[%s2684_s1 + $0xdc] sm:$0xf]  ;;  %v2333_v3 = vld [vmem:[%s2684_s1 + $0xe0] sm:$0xf] }
  0x2e   : > { %406 = vst [vmem:[#allocation2 + $0xe8] sm:$0xff] %v1670_v33  ;;  %726 = vst [vmem:[#allocation2 + $0x2f8] sm:$0xff] %v1670_v33  ;;  %v2338_v4 = vld [vmem:[%s2684_s1 + $0xe4] sm:$0xf]  ;;  %v1682_v5 = vcombine.low %v2321_v0, %v2328_v2  ;;  %v2347_v7 = vld [vmem:[%s2684_s1 + $0xe8] sm:$0xf] }
  0x2f   : > { %455 = vst [vmem:[#allocation2 + $0x10] sm:$0xff] %v1671_v34  ;;  %735 = vst [vmem:[#allocation2 + $0x308] sm:$0xff] %v1671_v34  ;;  %v1683_v6 = vcombine.low %v2333_v3, %v2338_v4  ;;  %v2352_v11 = vld [vmem:[%s2684_s1 + $0xec] sm:$0xf]  ;;  %v2357_v15 = vld [vmem:[%s2684_s1 + $0xf0] sm:$0xf] }
  0x30   : > { %456 = vst [vmem:[#allocation2 + $0x30] sm:$0xff] %v1672_v38  ;;  %736 = vst [vmem:[#allocation2 + $0x328] sm:$0xff] %v1672_v38  ;;  %v1684_v16 = vcombine.low %v2347_v7, %v2352_v11  ;;  %v2364_v20 = vld [vmem:[%s2684_s1 + $0xf4] sm:$0xf]  ;;  %v2369_v24 = vld [vmem:[%s2684_s1 + $0xf8] sm:$0xf] }
  0x31   : > { %457 = vst [vmem:[#allocation2 + $0x50] sm:$0xff] %v1673_v42  ;;  %737 = vst [vmem:[#allocation2 + $0x348] sm:$0xff] %v1673_v42  ;;  %v2374_v25 = vld [vmem:[%s2684_s1 + $0xfc] sm:$0xf]  ;;  %v1685_v29 = vcombine.low %v2357_v15, %v2364_v20  ;;  %v247_v34 = vsub.bf16 0, %v2095_v8  ;;  %v248_v38 = vsub.bf16 0, %v2100_v9 }
  0x32   : > { %458 = vst [vmem:[#allocation2 + $0x70] sm:$0xff] %v1674_v43  ;;  %738 = vst [vmem:[#allocation2 + $0x368] sm:$0xff] %v1674_v43  ;;  %v1686_v33 = vcombine.low %v2369_v24, %v2374_v25  ;;  %v249_v42 = vsub.bf16 0, %v2105_v10  ;;  %v250_v43 = vsub.bf16 0, %v2112_v12  ;;  %v254_v8 = vsub.bf16 0, %v2136_v18 }
  0x33   : > { %459 = vst [vmem:[#allocation2 + $0x90] sm:$0xff] %v1675_v47  ;;  %739 = vst [vmem:[#allocation2 + $0x388] sm:$0xff] %v1675_v47  ;;  %v251_v47 = vsub.bf16 0, %v2117_v13  ;;  %v255_v9 = vsub.bf16 0, %v2141_v19  ;;  %v256_v10 = vsub.bf16 0, %v2148_v21  ;;  %v257_v12 = vsub.bf16 0, %v2153_v22 }
  0x34   : > { %460 = vst [vmem:[#allocation2 + $0xb0] sm:$0xff] %v1676_v51  ;;  %740 = vst [vmem:[#allocation2 + $0x3a8] sm:$0xff] %v1676_v51  ;;  %v252_v51 = vsub.bf16 0, %v2122_v14  ;;  %v258_v14 = vsub.bf16 0, %v2158_v23  ;;  %v261_v18 = vsub.bf16 0, %v2177_v28  ;;  %v262_v19 = vsub.bf16 0, %v2184_v30 }
  0x35   : > { %461 = vst [vmem:[#allocation2 + $0xd0] sm:$0xff] %v1677_v52  ;;  %741 = vst [vmem:[#allocation2 + $0x3c8] sm:$0xff] %v1677_v52  ;;  %v1687_v52 = vcombine.low %v247_v34, %v248_v38  ;;  %v263_v21 = vsub.bf16 0, %v2189_v31  ;;  %v264_v23 = vsub.bf16 0, %v2194_v32  ;;  %v268_v28 = vsub.bf16 0, %v2220_v39 }
  0x36   : > { %462 = vst [vmem:[#allocation2 + $0xf0] sm:$0xff] %v1678_v56  ;;  %742 = vst [vmem:[#allocation2 + $0x3e8] sm:$0xff] %v1678_v56  ;;  %v253_v56 = vsub.bf16 0, %v2131_v17  ;;  %v1691_v17 = vcombine.low %v255_v9, %v256_v10  ;;  %v1692_v22 = vcombine.low %v257_v12, %v258_v14  ;;  %v269_v31 = vsub.bf16 0, %v2225_v40 }
  0x37   : > { %511 = vst [vmem:[#allocation2 + $0x18] sm:$0xff] %v1679_v60  ;;  %583 = vst [vmem:[#allocation2 + $0x110] sm:$0xff] %v1679_v60  ;;  %v1688_v60 = vcombine.low %v249_v42, %v250_v43  ;;  %v1695_v30 = vcombine.low %v263_v21, %v264_v23  ;;  %v270_v32 = vsub.bf16 0, %v2230_v41  ;;  %v274_v38 = vsub.bf16 0, %v2256_v48 }
  0x38   : > { %512 = vst [vmem:[#allocation2 + $0x38] sm:$0xff] %v1680_v61  ;;  %584 = vst [vmem:[#allocation2 + $0x130] sm:$0xff] %v1680_v61  ;;  %v1689_v61 = vcombine.low %v251_v47, %v252_v51  ;;  %v1690_v13 = vcombine.low %v253_v56, %v254_v8  ;;  %v275_v42 = vsub.bf16 0, %v2261_v49  ;;  %v276_v40 = vsub.bf16 0, %v2266_v50 }
  0x39   : > { %513 = vst [vmem:[#allocation2 + $0x58] sm:$0xff] %v1681_v1  ;;  %585 = vst [vmem:[#allocation2 + $0x150] sm:$0xff] %v1681_v1  ;;  %v259_v1 = vsub.bf16 0, %v2167_v26  ;;  %v265_v26 = vsub.bf16 0, %v2203_v35  ;;  %v271_v35 = vsub.bf16 0, %v2239_v44  ;;  %v1698_v39 = vcombine.low %v269_v31, %v270_v32 }
  0x3a   : > { %514 = vst [vmem:[#allocation2 + $0x78] sm:$0xff] %v1682_v5  ;;  %586 = vst [vmem:[#allocation2 + $0x170] sm:$0xff] %v1682_v5  ;;  %v260_v5 = vsub.bf16 0, %v2172_v27  ;;  %v1694_v27 = vcombine.low %v261_v18, %v262_v19  ;;  %v277_v44 = vsub.bf16 0, %v2275_v53  ;;  %v1701_v47 = vcombine.low %v275_v42, %v276_v40 }
  0x3b   : > { %515 = vst [vmem:[#allocation2 + $0x98] sm:$0xff] %v1683_v6  ;;  %587 = vst [vmem:[#allocation2 + $0x190] sm:$0xff] %v1683_v6  ;;  %v280_v48 = vsub.bf16 0, %v2292_v57  ;;  %v281_v49 = vsub.bf16 0, %v2297_v58  ;;  %v282_v51 = vsub.bf16 0, %v2302_v59  ;;  %v284_v53 = vsub.bf16 0, %v2316_v63 }
  0x3c   : > { %516 = vst [vmem:[#allocation2 + $0xb8] sm:$0xff] %v1684_v16  ;;  %588 = vst [vmem:[#allocation2 + $0x1b0] sm:$0xff] %v1684_v16  ;;  %v1693_v6 = vcombine.low %v259_v1, %v260_v5  ;;  %v266_v16 = vsub.bf16 0, %v2208_v36  ;;  %v272_v36 = vsub.bf16 0, %v2244_v45  ;;  %v278_v45 = vsub.bf16 0, %v2280_v54 }
  0x3d   : > { %517 = vst [vmem:[#allocation2 + $0xd8] sm:$0xff] %v1685_v29  ;;  %589 = vst [vmem:[#allocation2 + $0x1d0] sm:$0xff] %v1685_v29  ;;  %v267_v29 = vsub.bf16 0, %v2213_v37  ;;  %v273_v37 = vsub.bf16 0, %v2249_v46  ;;  %v279_v46 = vsub.bf16 0, %v2285_v55  ;;  %v285_v55 = vsub.bf16 0, %v2321_v0 }
  0x3e   : > { %518 = vst [vmem:[#allocation2 + $0xf8] sm:$0xff] %v1686_v33  ;;  %590 = vst [vmem:[#allocation2 + $0x1f0] sm:$0xff] %v1686_v33  ;;  %v1696_v33 = vcombine.low %v265_v26, %v266_v16  ;;  %v1699_v41 = vcombine.low %v271_v35, %v272_v36  ;;  %v1702_v50 = vcombine.low %v277_v44, %v278_v45  ;;  %v286_v57 = vsub.bf16 0, %v2328_v2 }
  0x3f   : > { %567 = vst [vmem:[#allocation2 + $0x100] sm:$0xff] %v1687_v52  ;;  %743 = vst [vmem:[#allocation2 + $0x310] sm:$0xff] %v1687_v52  ;;  %v1697_v34 = vcombine.low %v267_v29, %v268_v28  ;;  %v1700_v43 = vcombine.low %v273_v37, %v274_v38  ;;  %v283_v52 = vsub.bf16 0, %v2311_v62  ;;  %v1703_v54 = vcombine.low %v279_v46, %v280_v48 }
  0x40   : > { %568 = vst [vmem:[#allocation2 + $0x120] sm:$0xff] %v1688_v60  ;;  %744 = vst [vmem:[#allocation2 + $0x330] sm:$0xff] %v1688_v60  ;;  %v287_v58 = vsub.bf16 0, %v2333_v3  ;;  %v1704_v56 = vcombine.low %v281_v49, %v282_v51  ;;  %v288_v59 = vsub.bf16 0, %v2338_v4  ;;  %v289_v62 = vsub.bf16 0, %v2347_v7 }
  0x41   : > { %569 = vst [vmem:[#allocation2 + $0x140] sm:$0xff] %v1689_v61  ;;  %745 = vst [vmem:[#allocation2 + $0x350] sm:$0xff] %v1689_v61  ;;  %v1705_v8 = vcombine.low %v283_v52, %v284_v53  ;;  %v1706_v63 = vcombine.low %v285_v55, %v286_v57  ;;  %v290_v9 = vsub.bf16 0, %v2352_v11  ;;  %v291_v60 = vsub.bf16 0, %v2357_v15 }
  0x42   : > { %570 = vst [vmem:[#allocation2 + $0x160] sm:$0xff] %v1690_v13  ;;  %746 = vst [vmem:[#allocation2 + $0x370] sm:$0xff] %v1690_v13  ;;  %v292_v0 = vsub.bf16 0, %v2364_v20  ;;  %v1707_v2 = vcombine.low %v287_v58, %v288_v59  ;;  %v293_v3 = vsub.bf16 0, %v2369_v24  ;;  %v294_v4 = vsub.bf16 0, %v2374_v25 }
  0x43   : > { %571 = vst [vmem:[#allocation2 + $0x180] sm:$0xff] %v1691_v17  ;;  %747 = vst [vmem:[#allocation2 + $0x390] sm:$0xff] %v1691_v17  ;;  %v1708_v7 = vcombine.low %v289_v62, %v290_v9 }
  0x44   : > { %572 = vst [vmem:[#allocation2 + $0x1a0] sm:$0xff] %v1692_v22  ;;  %748 = vst [vmem:[#allocation2 + $0x3b0] sm:$0xff] %v1692_v22  ;;  %v1709_v61 = vcombine.low %v291_v60, %v292_v0  ;;  %v1710_v11 = vcombine.low %v293_v3, %v294_v4 }
  0x45   : > { %573 = vst [vmem:[#allocation2 + $0x1c0] sm:$0xff] %v1693_v6  ;;  %749 = vst [vmem:[#allocation2 + $0x3d0] sm:$0xff] %v1693_v6 }
  0x46   : > { %574 = vst [vmem:[#allocation2 + $0x1e0] sm:$0xff] %v1694_v27  ;;  %750 = vst [vmem:[#allocation2 + $0x3f0] sm:$0xff] %v1694_v27 }
  0x47   : > { %639 = vst [vmem:[#allocation2 + $0x118] sm:$0xff] %v1695_v30  ;;  %647 = vst [vmem:[#allocation2 + $0x200] sm:$0xff] %v1695_v30 }
  0x48   : > { %640 = vst [vmem:[#allocation2 + $0x138] sm:$0xff] %v1696_v33  ;;  %648 = vst [vmem:[#allocation2 + $0x220] sm:$0xff] %v1696_v33 }
  0x49   : > { %641 = vst [vmem:[#allocation2 + $0x158] sm:$0xff] %v1697_v34  ;;  %649 = vst [vmem:[#allocation2 + $0x240] sm:$0xff] %v1697_v34 }
  0x4a   : > { %642 = vst [vmem:[#allocation2 + $0x178] sm:$0xff] %v1698_v39  ;;  %650 = vst [vmem:[#allocation2 + $0x260] sm:$0xff] %v1698_v39 }
  0x4b   : > { %643 = vst [vmem:[#allocation2 + $0x198] sm:$0xff] %v1699_v41  ;;  %651 = vst [vmem:[#allocation2 + $0x280] sm:$0xff] %v1699_v41 }
  0x4c   : > { %644 = vst [vmem:[#allocation2 + $0x1b8] sm:$0xff] %v1700_v43  ;;  %652 = vst [vmem:[#allocation2 + $0x2a0] sm:$0xff] %v1700_v43 }
  0x4d   : > { %645 = vst [vmem:[#allocation2 + $0x1d8] sm:$0xff] %v1701_v47  ;;  %653 = vst [vmem:[#allocation2 + $0x2c0] sm:$0xff] %v1701_v47 }
  0x4e   : > { %646 = vst [vmem:[#allocation2 + $0x1f8] sm:$0xff] %v1702_v50  ;;  %654 = vst [vmem:[#allocation2 + $0x2e0] sm:$0xff] %v1702_v50 }
  0x4f   : > { %703 = vst [vmem:[#allocation2 + $0x208] sm:$0xff] %v1703_v54  ;;  %727 = vst [vmem:[#allocation2 + $0x300] sm:$0xff] %v1703_v54 }
  0x50   : > { %704 = vst [vmem:[#allocation2 + $0x228] sm:$0xff] %v1704_v56  ;;  %728 = vst [vmem:[#allocation2 + $0x320] sm:$0xff] %v1704_v56 }
  0x51   : > { %705 = vst [vmem:[#allocation2 + $0x248] sm:$0xff] %v1705_v8  ;;  %729 = vst [vmem:[#allocation2 + $0x340] sm:$0xff] %v1705_v8 }
  0x52   : > { %706 = vst [vmem:[#allocation2 + $0x268] sm:$0xff] %v1706_v63  ;;  %730 = vst [vmem:[#allocation2 + $0x360] sm:$0xff] %v1706_v63 }
  0x53   : > { %707 = vst [vmem:[#allocation2 + $0x288] sm:$0xff] %v1707_v2  ;;  %731 = vst [vmem:[#allocation2 + $0x380] sm:$0xff] %v1707_v2 }
  0x54   : > { %708 = vst [vmem:[#allocation2 + $0x2a8] sm:$0xff] %v1708_v7  ;;  %732 = vst [vmem:[#allocation2 + $0x3a0] sm:$0xff] %v1708_v7 }
  0x55   : > { %709 = vst [vmem:[#allocation2 + $0x2c8] sm:$0xff] %v1709_v61  ;;  %733 = vst [vmem:[#allocation2 + $0x3c0] sm:$0xff] %v1709_v61 }
  0x56   : > { %710 = vst [vmem:[#allocation2 + $0x2e8] sm:$0xff] %v1710_v11  ;;  %734 = vst [vmem:[#allocation2 + $0x3e0] sm:$0xff] %v1710_v11 }
  0x57 PF: > { %v856_v15 = vld [vmem:[#allocation2 + $0x8] sm:$0xff]  ;;  %v858_v20 = vld [vmem:[#allocation2 + $0x18] sm:$0xff]  ;;  %v857_v24 = vld [vmem:[#allocation2 + $0x10] sm:$0xff]  ;;  %s1536_s20 = sshll.u32 %s2065_s4, 4  ;;  %s2642_s27 = scalar_lea.sflag [#allocation4], %s164_s24  ;;  %s2630_s20 = int_to_ptr.vmem [resolvable:$true] %s1536_s20 }
  0x58   : > { %1005 = vmatprep.subr.bf16.mxu0 %v856_v15  ;;  %1231 = vmatprep.subr.bf16.mxu1 %v858_v20  ;;  %v860_v25 = vld [vmem:[#allocation2 + $0x28] sm:$0xff]  ;;  %v862_v12 = vld [vmem:[#allocation2 + $0x38] sm:$0xff]  ;;  %v861_v14 = vld [vmem:[#allocation2 + $0x30] sm:$0xff]  ;;  %s1921_s28 = scalar_lea.vmem %s2630_s20, 8192  ;;  %s1985_s29 = smov [#allocation3]  }
  0x59   : > { %v855_v10 = vld [vmem:[#allocation2] sm:$0xff]  ;;  %1232 = vmatpush1.bf16.msra.mxu1 %v857_v24  ;;  %v864_v1 = vld [vmem:[#allocation2 + $0x48] sm:$0xff]  ;;  %v866_v5 = vld [vmem:[#allocation2 + $0x58] sm:$0xff]  ;;  %p1922_p12 = scmp.ne.s32.totalorder %s2630_s20, %s1921_s28  ;;  %s1925_s5 = sshll.u32 %s1985_s29, 4  ;;  %s1926_s5 = int_to_ptr.vmem [resolvable:$false] %s1925_s5 }
  0x5a   : > { %1006 = vmatpush1.bf16.msra.mxu0 %v855_v10  ;;  %1233 = vmatprep.subr.bf16.mxu1 %v862_v12  ;;  %v865_v18 = vld [vmem:[#allocation2 + $0x50] sm:$0xff]  ;;  %v868_v19 = vld [vmem:[#allocation2 + $0x68] sm:$0xff]  ;;  %v870_v21 = vld [vmem:[#allocation2 + $0x78] sm:$0xff]  ;;  %s1927_s6 = scalar_lea.vmem %s1926_s5, 16384  ;;  %p1928_p1 = scmp.lt.s32.totalorder %s2630_s20, %s1926_s5 }
  0x5b   : > { %1007 = vmatprep.subr.bf16.mxu0 %v860_v25  ;;  %v859_v13 = vld [vmem:[#allocation2 + $0x20] sm:$0xff]  ;;  %v869_v6 = vld [vmem:[#allocation2 + $0x70] sm:$0xff]  ;;  %v872_v23 = vld [vmem:[#allocation2 + $0x88] sm:$0xff]  ;;  %p1923_p13 = pnand %p1922_p12, %p2046_p5  ;;  %p1929_p2 = scmp.lt.s32.totalorder %s1927_s6, %s1921_s28 }
  0x5c   : > { %v867_v22 = vld [vmem:[#allocation2 + $0x60] sm:$0xff]  ;;  %v874_v26 = vld [vmem:[#allocation2 + $0x98] sm:$0xff]  ;;  %v873_v16 = vld [vmem:[#allocation2 + $0x90] sm:$0xff] }
  0x5d   : > { %1234 = vmatpush1.bf16.msra.mxu1 %v861_v14  ;;  %v863_v17 = vld [vmem:[#allocation2 + $0x40] sm:$0xff]  ;;  %v876_v29 = vld [vmem:[#allocation2 + $0xa8] sm:$0xff]  ;;  %v878_v28 = vld [vmem:[#allocation2 + $0xb8] sm:$0xff]  ;;  %p1924_p0 = pneg %p1923_p13  ;;  %p1930_p3 = por %p1929_p2, %p1928_p1 }
  0x5e   : > { %1008 = vmatpush1.bf16.msra.mxu0 %v859_v13  ;;  %1235 = vmatprep.subr.bf16.mxu1 %v866_v5  ;;  %v871_v27 = vld [vmem:[#allocation2 + $0x80] sm:$0xff]  ;;  %v877_v31 = vld [vmem:[#allocation2 + $0xb0] sm:$0xff]  ;;  %v880_v32 = vld [vmem:[#allocation2 + $0xc8] sm:$0xff] }
  0x5f   : > { %1009 = vmatprep.subr.bf16.mxu0 %v864_v1  ;;  %v875_v30 = vld [vmem:[#allocation2 + $0xa0] sm:$0xff]  ;;  %v882_v35 = vld [vmem:[#allocation2 + $0xd8] sm:$0xff]  ;;  %v760_v33 = vld [vmem:[%s2063_s30 + $0x8] sm:$0xff]  ;;  %p1931_p4 = pnand %p1930_p3, %p1924_p0 }
  0x60   : > { %v764_v34 = vld [vmem:[%s2063_s30 + $0x28] sm:$0xff]  ;;  %v879_v37 = vld [vmem:[#allocation2 + $0xc0] sm:$0xff]  ;;  %v881_v39 = vld [vmem:[#allocation2 + $0xd0] sm:$0xff] }
  0x61   : > { %1236 = vmatpush1.bf16.msra.mxu1 %v865_v18  ;;  %v824_v36 = vpack.c.bf16 %v764_v34, %v760_v33  ;;  %v884_v38 = vld [vmem:[#allocation2 + $0xe8] sm:$0xff]  ;;  %v886_v42 = vld [vmem:[#allocation2 + $0xf8] sm:$0xff]  ;;  %v883_v40 = vld [vmem:[#allocation2 + $0xe0] sm:$0xff] }
  0x62   : > { %1010 = vmatpush1.bf16.msra.mxu0 %v863_v17  ;;  %1237 = vmatprep.subr.bf16.mxu1 %v870_v21  ;;  %v885_v41 = vld [vmem:[#allocation2 + $0xf0] sm:$0xff]  ;;  %v888_v44 = vld [vmem:[#allocation2 + $0x108] sm:$0xff]  ;;  %v890_v45 = vld [vmem:[#allocation2 + $0x118] sm:$0xff] }
  0x63   : > { %1011 = vmatprep.subr.bf16.mxu0 %v868_v19  ;;  %1037 = vmatprep.mubr.bf16.mxu0 %v824_v36  ;;  %v887_v46 = vld [vmem:[#allocation2 + $0x100] sm:$0xff]  ;;  %v889_v43 = vld [vmem:[#allocation2 + $0x110] sm:$0xff]  ;;  %v892_v47 = vld [vmem:[#allocation2 + $0x128] sm:$0xff] }
  0x64   : > { %1263 = vmatprep.mubr.bf16.mxu1 %v824_v36  ;;  %v894_v48 = vld [vmem:[#allocation2 + $0x138] sm:$0xff]  ;;  %v891_v49 = vld [vmem:[#allocation2 + $0x120] sm:$0xff]  ;;  %v893_v50 = vld [vmem:[#allocation2 + $0x130] sm:$0xff] }
  0x65   : > { %1238 = vmatpush1.bf16.msra.mxu1 %v869_v6  ;;  %v896_v51 = vld [vmem:[#allocation2 + $0x148] sm:$0xff]  ;;  %v898_v52 = vld [vmem:[#allocation2 + $0x158] sm:$0xff]  ;;  %v895_v53 = vld [vmem:[#allocation2 + $0x140] sm:$0xff] }
  0x66   : > { %1012 = vmatpush1.bf16.msra.mxu0 %v867_v22  ;;  %1239 = vmatprep.subr.bf16.mxu1 %v874_v26  ;;  %v897_v54 = vld [vmem:[#allocation2 + $0x150] sm:$0xff]  ;;  %v900_v55 = vld [vmem:[#allocation2 + $0x168] sm:$0xff]  ;;  %v902_v57 = vld [vmem:[#allocation2 + $0x178] sm:$0xff] }
  0x67   : > { %1013 = vmatprep.subr.bf16.mxu0 %v872_v23  ;;  %v899_v58 = vld [vmem:[#allocation2 + $0x160] sm:$0xff]  ;;  %v901_v56 = vld [vmem:[#allocation2 + $0x170] sm:$0xff]  ;;  %v904_v8 = vld [vmem:[#allocation2 + $0x188] sm:$0xff] }
  0x68   : > { %v906_v59 = vld [vmem:[#allocation2 + $0x198] sm:$0xff]  ;;  %v903_v62 = vld [vmem:[#allocation2 + $0x180] sm:$0xff]  ;;  %v905_v63 = vld [vmem:[#allocation2 + $0x190] sm:$0xff] }
  0x69   : > { %1240 = vmatpush1.bf16.msra.mxu1 %v873_v16  ;;  %v908_v9 = vld [vmem:[#allocation2 + $0x1a8] sm:$0xff]  ;;  %v910_v60 = vld [vmem:[#allocation2 + $0x1b8] sm:$0xff]  ;;  %v907_v0 = vld [vmem:[#allocation2 + $0x1a0] sm:$0xff] }
  0x6a   : > { %1014 = vmatpush1.bf16.msra.mxu0 %v871_v27  ;;  %1241 = vmatprep.subr.bf16.mxu1 %v878_v28  ;;  %v909_v2 = vld [vmem:[#allocation2 + $0x1b0] sm:$0xff]  ;;  %v912_v3 = vld [vmem:[#allocation2 + $0x1c8] sm:$0xff]  ;;  %v914_v4 = vld [vmem:[#allocation2 + $0x1d8] sm:$0xff] }
  0x6b   : > { %1015 = vmatprep.subr.bf16.mxu0 %v876_v29  ;;  %v911_v7 = vld [vmem:[#allocation2 + $0x1c0] sm:$0xff]  ;;  %v913_v61 = vld [vmem:[#allocation2 + $0x1d0] sm:$0xff]  ;;  %v916_v11 = vld [vmem:[#allocation2 + $0x1e8] sm:$0xff] }
  0x6c   : > { %v918_v15 = vld [vmem:[#allocation2 + $0x1f8] sm:$0xff]  ;;  %v759_v20 = vld [vmem:[%s2063_s30] sm:$0xff]  ;;  %v917_v25 = vld [vmem:[#allocation2 + $0x1f0] sm:$0xff] }
  0x6d   : > { %1242 = vmatpush1.bf16.msra.mxu1 %v877_v31  ;;  %v763_v10 = vld [vmem:[%s2063_s30 + $0x20] sm:$0xff]  ;;  %v920_v12 = vld [vmem:[#allocation2 + $0x208] sm:$0xff]  ;;  %v922_v13 = vld [vmem:[#allocation2 + $0x218] sm:$0xff] }
  0x6e   : > { %1016 = vmatpush1.bf16.msra.mxu0 %v875_v30  ;;  %1243 = vmatprep.subr.bf16.mxu1 %v882_v35  ;;  %v915_v24 = vld [vmem:[#allocation2 + $0x1e0] sm:$0xff]  ;;  %v823_v14 = vpack.c.bf16 %v763_v10, %v759_v20  ;;  %v768_v1 = vld [vmem:[%s2063_s30 + $0x48] sm:$0xff]  ;;  %v921_v18 = vld [vmem:[#allocation2 + $0x210] sm:$0xff] }
  0x6f   : > { %1017 = vmatprep.subr.bf16.mxu0 %v880_v32  ;;  %v772_v5 = vld [vmem:[%s2063_s30 + $0x68] sm:$0xff]  ;;  %v919_v17 = vld [vmem:[#allocation2 + $0x200] sm:$0xff]  ;;  %v926_v21 = vld [vmem:[#allocation2 + $0x238] sm:$0xff] }
  0x70   : > { %v924_v19 = vld [vmem:[#allocation2 + $0x228] sm:$0xff]  ;;  %v828_v22 = vpack.c.bf16 %v772_v5, %v768_v1  ;;  %v767_v6 = vld [vmem:[%s2063_s30 + $0x40] sm:$0xff]  ;;  %v925_v27 = vld [vmem:[#allocation2 + $0x230] sm:$0xff] }
  0x71   : > { %1244 = vmatpush1.bf16.msra.mxu1 %v881_v39  ;;  %v771_v23 = vld [vmem:[%s2063_s30 + $0x60] sm:$0xff]  ;;  %v928_v16 = vld [vmem:[#allocation2 + $0x248] sm:$0xff]  ;;  %v930_v29 = vld [vmem:[#allocation2 + $0x258] sm:$0xff] }
  0x72   : > { %1018 = vmatpush1.bf16.msra.mxu0 %v879_v37  ;;  %1245 = vmatprep.subr.bf16.mxu1 %v886_v42  ;;  %v923_v26 = vld [vmem:[#allocation2 + $0x220] sm:$0xff]  ;;  %v827_v28 = vpack.c.bf16 %v771_v23, %v767_v6  ;;  %v776_v30 = vld [vmem:[%s2063_s30 + $0x88] sm:$0xff]  ;;  %v929_v35 = vld [vmem:[#allocation2 + $0x250] sm:$0xff] }
  0x73   : > { %1019 = vmatprep.subr.bf16.mxu0 %v884_v38  ;;  %v780_v31 = vld [vmem:[%s2063_s30 + $0xa8] sm:$0xff]  ;;  %v927_v32 = vld [vmem:[#allocation2 + $0x240] sm:$0xff]  ;;  %v934_v34 = vld [vmem:[#allocation2 + $0x278] sm:$0xff] }
  0x74   : > { %v932_v33 = vld [vmem:[#allocation2 + $0x268] sm:$0xff]  ;;  %v832_v36 = vpack.c.bf16 %v780_v31, %v776_v30  ;;  %v775_v37 = vld [vmem:[%s2063_s30 + $0x80] sm:$0xff]  ;;  %v933_v42 = vld [vmem:[#allocation2 + $0x270] sm:$0xff] }
  0x75   : > { %1246 = vmatpush1.bf16.msra.mxu1 %v885_v41  ;;  %v779_v39 = vld [vmem:[%s2063_s30 + $0xa0] sm:$0xff]  ;;  %v938_v41 = vld [vmem:[#allocation2 + $0x298] sm:$0xff]  ;;  %v804_v20 = vld [vmem:[%s2063_s30 + $0x168] sm:$0xff] }
  0x76   : > { %1020 = vmatpush1.bf16.msra.mxu0 %v883_v40  ;;  %1247 = vmatprep.subr.bf16.mxu1 %v890_v45  ;;  %v931_v38 = vld [vmem:[#allocation2 + $0x260] sm:$0xff]  ;;  %v936_v40 = vld [vmem:[#allocation2 + $0x288] sm:$0xff] }
  0x77   : > { %1021 = vmatprep.subr.bf16.mxu0 %v888_v44  ;;  %v831_v44 = vpack.c.bf16 %v779_v39, %v775_v37  ;;  %v784_v45 = vld [vmem:[%s2063_s30 + $0xc8] sm:$0xff]  ;;  %v951_v10 = vld [vmem:[#allocation2 + $0x300] sm:$0xff] }
  0x78   : > { %v803_v1 = vld [vmem:[%s2063_s30 + $0x160] sm:$0xff]  ;;  %v812_v6 = vld [vmem:[%s2063_s30 + $0x1a8] sm:$0xff] }
  0x79   : > { %1248 = vmatpush1.bf16.msra.mxu1 %v889_v43  ;;  %v935_v43 = vld [vmem:[#allocation2 + $0x280] sm:$0xff]  ;;  %v820_v37 = vld [vmem:[%s2063_s30 + $0x1e8] sm:$0xff] }
  0x7a   : > { %1022 = vmatpush1.bf16.msra.mxu0 %v887_v46  ;;  %1249 = vmatprep.subr.bf16.mxu1 %v894_v48  ;;  %v788_v46 = vld [vmem:[%s2063_s30 + $0xe8] sm:$0xff]  ;;  %v955_v5 = vld [vmem:[#allocation2 + $0x320] sm:$0xff] }
  0x7b   : > { %1023 = vmatprep.subr.bf16.mxu0 %v892_v47  ;;  %v937_v47 = vld [vmem:[#allocation2 + $0x290] sm:$0xff]  ;;  %v940_v48 = vld [vmem:[#allocation2 + $0x2a8] sm:$0xff]  ;;  %v959_v23 = vld [vmem:[#allocation2 + $0x340] sm:$0xff] }
  0x7c   : > { %v811_v30 = vld [vmem:[%s2063_s30 + $0x1a0] sm:$0xff] }
  0x7d   : > { %1250 = vmatpush1.bf16.msra.mxu1 %v893_v50  ;;  %v836_v50 = vpack.c.bf16 %v788_v46, %v784_v45  ;;  %v963_v31 = vld [vmem:[#allocation2 + $0x360] sm:$0xff] }
  0x7e   : > { %1024 = vmatpush1.bf16.msra.mxu0 %v891_v49  ;;  %1251 = vmatprep.subr.bf16.mxu1 %v898_v52  ;;  %v942_v49 = vld [vmem:[#allocation2 + $0x2b8] sm:$0xff]  ;;  %v787_v52 = vld [vmem:[%s2063_s30 + $0xe0] sm:$0xff] }
  0x7f   : > { %1025 = vmatprep.subr.bf16.mxu0 %v896_v51  ;;  %v783_v51 = vld [vmem:[%s2063_s30 + $0xc0] sm:$0xff] }
  0x80   : > { %v967_v39 = vld [vmem:[#allocation2 + $0x380] sm:$0xff] }
  0x81   : > { %1252 = vmatpush1.bf16.msra.mxu1 %v897_v54  ;;  %v941_v54 = vld [vmem:[#allocation2 + $0x2b0] sm:$0xff]  ;;  %v819_v45 = vld [vmem:[%s2063_s30 + $0x1e0] sm:$0xff] }
  0x82   : > { %1026 = vmatpush1.bf16.msra.mxu0 %v895_v53  ;;  %1253 = vmatprep.subr.bf16.mxu1 %v902_v57  ;;  %v939_v53 = vld [vmem:[#allocation2 + $0x2a0] sm:$0xff]  ;;  %v946_v57 = vld [vmem:[#allocation2 + $0x2d8] sm:$0xff] }
  0x83   : > { %1027 = vmatprep.subr.bf16.mxu0 %v900_v55  ;;  %v944_v55 = vld [vmem:[#allocation2 + $0x2c8] sm:$0xff]  ;;  %v971_v46 = vld [vmem:[#allocation2 + $0x3a0] sm:$0xff] }
  0x85   : > { %1254 = vmatpush1.bf16.msra.mxu1 %v901_v56  ;;  %v792_v56 = vld [vmem:[%s2063_s30 + $0x108] sm:$0xff] }
  0x86   : > { %1028 = vmatpush1.bf16.msra.mxu0 %v899_v58  ;;  %1255 = vmatprep.subr.bf16.mxu1 %v906_v59  ;;  %v835_v58 = vpack.c.bf16 %v787_v52, %v783_v51  ;;  %v943_v59 = vld [vmem:[#allocation2 + $0x2c0] sm:$0xff]  ;;  %v766_v51 = vld [vmem:[%s2063_s30 + $0x38] sm:$0xff] }
  0x87   : > { %1029 = vmatprep.subr.bf16.mxu0 %v904_v8  ;;  %v796_v8 = vld [vmem:[%s2063_s30 + $0x128] sm:$0xff]  ;;  %v975_v52 = vld [vmem:[#allocation2 + $0x3c0] sm:$0xff] }
  0x89   : > { %1256 = vmatpush1.bf16.msra.mxu1 %v905_v63  ;;  %v948_v63 = vld [vmem:[#allocation2 + $0x2e8] sm:$0xff] }
  0x8a   : > { %1030 = vmatpush1.bf16.msra.mxu0 %v903_v62  ;;  %1257 = vmatprep.subr.bf16.mxu1 %v910_v60  ;;  %v945_v62 = vld [vmem:[#allocation2 + $0x2d0] sm:$0xff]  ;;  %v840_v60 = vpack.c.bf16 %v796_v8, %v792_v56 }
  0x8b   : > { %1031 = vmatprep.subr.bf16.mxu0 %v908_v9  ;;  %v950_v9 = vld [vmem:[#allocation2 + $0x2f8] sm:$0xff]  ;;  %v761_v56 = vld [vmem:[%s2063_s30 + $0x10] sm:$0xff] }
  0x8c   : > { %v765_v8 = vld [vmem:[%s2063_s30 + $0x30] sm:$0xff] }
  0x8d   : > { %1258 = vmatpush1.bf16.msra.mxu1 %v909_v2  ;;  %v795_v2 = vld [vmem:[%s2063_s30 + $0x120] sm:$0xff] }
  0x8e   : > { %1032 = vmatpush1.bf16.msra.mxu0 %v907_v0  ;;  %1259 = vmatprep.subr.bf16.mxu1 %v914_v4  ;;  %v791_v0 = vld [vmem:[%s2063_s30 + $0x100] sm:$0xff]  ;;  %v949_v4 = vld [vmem:[#allocation2 + $0x2f0] sm:$0xff] }
  0x8f   : > { %1033 = vmatprep.subr.bf16.mxu0 %v912_v3  ;;  %v947_v3 = vld [vmem:[#allocation2 + $0x2e0] sm:$0xff] }
  0x91   : > { %1260 = vmatpush1.bf16.msra.mxu1 %v913_v61  ;;  %v954_v61 = vld [vmem:[#allocation2 + $0x318] sm:$0xff] }
  0x92   : > { %1034 = vmatpush1.bf16.msra.mxu0 %v911_v7  ;;  %1261 = vmatprep.subr.bf16.mxu1 %v918_v15  ;;  %v952_v7 = vld [vmem:[#allocation2 + $0x308] sm:$0xff] }
  0x93   : > { %1035 = vmatprep.subr.bf16.mxu0 %v916_v11  ;;  %v839_v11 = vpack.c.bf16 %v795_v2, %v791_v0  ;;  %v800_v15 = vld [vmem:[%s2063_s30 + $0x148] sm:$0xff]  ;;  %v769_v0 = vld [vmem:[%s2063_s30 + $0x50] sm:$0xff] }
  0x94   : > { %v773_v2 = vld [vmem:[%s2063_s30 + $0x70] sm:$0xff] }
  0x95   : > { %1262 = vmatpush1.bf16.msra.mxu1 %v917_v25  ;;  %v956_v25 = vld [vmem:[#allocation2 + $0x328] sm:$0xff] }
  0x96   : > { %1036 = vmatpush1.bf16.msra.mxu0 %v915_v24  ;;  %1344 = vmatprep.subr.bf16.mxu1 %v922_v13  ;;  %v953_v24 = vld [vmem:[#allocation2 + $0x310] sm:$0xff]  ;;  %v844_v13 = vpack.c.bf16 %v804_v20, %v800_v15  ;;  %v786_v20 = vld [vmem:[%s2063_s30 + $0xd8] sm:$0xff] }
  0x97   : > { %1118 = vmatprep.subr.bf16.mxu0 %v920_v12  ;;  %v958_v12 = vld [vmem:[#allocation2 + $0x338] sm:$0xff]  ;;  %v781_v15 = vld [vmem:[%s2063_s30 + $0xb0] sm:$0xff] }
  0x98   : > { %1264 = vmatmul.mubr.bf16.vlgmr.msra.gmra.mrb[0].mxu1 %v823_v14 }
  0x99   : > { %1038 = vmatmul.mubr.bf16.vlgmr.msra.gmra.mrb[0].mxu0 %v823_v14  ;;  %1345 = vmatpush1.bf16.msra.mxu1 %v921_v18  ;;  %v799_v14 = vld [vmem:[%s2063_s30 + $0x140] sm:$0xff]  ;;  %v960_v18 = vld [vmem:[#allocation2 + $0x348] sm:$0xff] }
  0x9a   : > { %1119 = vmatpush1.bf16.msra.mxu0 %v919_v17  ;;  %1346 = vmatprep.subr.bf16.mxu1 %v926_v21  ;;  %v957_v17 = vld [vmem:[#allocation2 + $0x330] sm:$0xff]  ;;  %v843_v21 = vpack.c.bf16 %v803_v1, %v799_v14  ;;  %v794_v14 = vld [vmem:[%s2063_s30 + $0x118] sm:$0xff] }
  0x9b   : > { %1120 = vmatprep.subr.bf16.mxu0 %v924_v19  ;;  %1047 = vmatprep.mubr.bf16.mxu0 %v828_v22  ;;  %v962_v19 = vld [vmem:[#allocation2 + $0x358] sm:$0xff] }
  0x9c   : > { %1273 = vmatprep.mubr.bf16.mxu1 %v828_v22  ;;  %v808_v22 = vld [vmem:[%s2063_s30 + $0x188] sm:$0xff]  ;;  %v798_v1 = vld [vmem:[%s2063_s30 + $0x138] sm:$0xff] }
  0x9d   : > { %1347 = vmatpush1.bf16.msra.mxu1 %v925_v27  ;;  %v964_v27 = vld [vmem:[#allocation2 + $0x368] sm:$0xff] }
  0x9e   : > { %1121 = vmatpush1.bf16.msra.mxu0 %v923_v26  ;;  %1348 = vmatprep.subr.bf16.mxu1 %v930_v29  ;;  %v961_v26 = vld [vmem:[#allocation2 + $0x350] sm:$0xff]  ;;  %v848_v29 = vpack.c.bf16 %v812_v6, %v808_v22  ;;  %v806_v22 = vld [vmem:[%s2063_s30 + $0x178] sm:$0xff] }
  0x9f   : > { %1122 = vmatprep.subr.bf16.mxu0 %v928_v16  ;;  %v966_v16 = vld [vmem:[#allocation2 + $0x378] sm:$0xff] }
  0xa0   : > { %1274 = vmatmul.mubr.bf16.gmra.mrb[4].mxu1 %v827_v28 }
  0xa1   : > { %1048 = vmatmul.mubr.bf16.gmra.mrb[4].mxu0 %v827_v28  ;;  %1349 = vmatpush1.bf16.msra.mxu1 %v929_v35  ;;  %v807_v28 = vld [vmem:[%s2063_s30 + $0x180] sm:$0xff]  ;;  %v968_v35 = vld [vmem:[#allocation2 + $0x388] sm:$0xff] }
  0xa2   : > { %1123 = vmatpush1.bf16.msra.mxu0 %v927_v32  ;;  %1350 = vmatprep.subr.bf16.mxu1 %v934_v34  ;;  %v965_v32 = vld [vmem:[#allocation2 + $0x370] sm:$0xff]  ;;  %v847_v34 = vpack.c.bf16 %v811_v30, %v807_v28 }
  0xa3   : > { %1124 = vmatprep.subr.bf16.mxu0 %v932_v33  ;;  %1057 = vmatprep.mubr.bf16.mxu0 %v832_v36  ;;  %v970_v33 = vld [vmem:[#allocation2 + $0x398] sm:$0xff] }
  0xa4   : > { %1283 = vmatprep.mubr.bf16.mxu1 %v832_v36  ;;  %v816_v36 = vld [vmem:[%s2063_s30 + $0x1c8] sm:$0xff] }
  0xa5   : > { %1351 = vmatpush1.bf16.msra.mxu1 %v933_v42  ;;  %v972_v42 = vld [vmem:[#allocation2 + $0x3a8] sm:$0xff] }
  0xa6   : > { %1125 = vmatpush1.bf16.msra.mxu0 %v931_v38  ;;  %1352 = vmatprep.subr.bf16.mxu1 %v938_v41  ;;  %v969_v38 = vld [vmem:[#allocation2 + $0x390] sm:$0xff]  ;;  %v852_v41 = vpack.c.bf16 %v820_v37, %v816_v36 }
  0xa7   : > { %1126 = vmatprep.subr.bf16.mxu0 %v936_v40  ;;  %v974_v40 = vld [vmem:[#allocation2 + $0x3b8] sm:$0xff]  ;;  %v817_v37 = vld [vmem:[%s2063_s30 + $0x1d0] sm:$0xff] }
  0xa8   : > { %1284 = vmatmul.mubr.bf16.gmra.mrb[8].mxu1 %v831_v44 }
  0xa9   : > { %1058 = vmatmul.mubr.bf16.gmra.mrb[8].mxu0 %v831_v44  ;;  %1353 = vmatpush1.bf16.msra.mxu1 %v937_v47  ;;  %v815_v44 = vld [vmem:[%s2063_s30 + $0x1c0] sm:$0xff]  ;;  %v976_v47 = vld [vmem:[#allocation2 + $0x3c8] sm:$0xff] }
  0xaa   : > { %1127 = vmatpush1.bf16.msra.mxu0 %v935_v43  ;;  %1354 = vmatprep.subr.bf16.mxu1 %v942_v49  ;;  %v973_v43 = vld [vmem:[#allocation2 + $0x3b0] sm:$0xff]  ;;  %v851_v49 = vpack.c.bf16 %v819_v45, %v815_v44  ;;  %v983_v45 = vld [vmem:[%s2685_s2] sm:$0xf] }
  0xab   : > { %1128 = vmatprep.subr.bf16.mxu0 %v940_v48  ;;  %1067 = vmatprep.mubr.bf16.mxu0 %v836_v50  ;;  %v978_v48 = vld [vmem:[#allocation2 + $0x3d8] sm:$0xff] }
  0xac   : > { %1293 = vmatprep.mubr.bf16.mxu1 %v836_v50  ;;  %v762_v50 = vld [vmem:[%s2063_s30 + $0x18] sm:$0xff] }
  0xad   : > { %1355 = vmatpush1.bf16.msra.mxu1 %v941_v54  ;;  %v980_v54 = vld [vmem:[#allocation2 + $0x3e8] sm:$0xff] }
  0xae   : > { %1129 = vmatpush1.bf16.msra.mxu0 %v939_v53  ;;  %1356 = vmatprep.subr.bf16.mxu1 %v946_v57  ;;  %v977_v53 = vld [vmem:[#allocation2 + $0x3d0] sm:$0xff]  ;;  %v826_v57 = vpack.c.bf16 %v766_v51, %v762_v50 }
  0xaf   : > { %1130 = vmatprep.subr.bf16.mxu0 %v944_v55  ;;  %v982_v55 = vld [vmem:[#allocation2 + $0x3f8] sm:$0xff] }
  0xb0   : > { %1294 = vmatmul.mubr.bf16.gmra.mrb[12].mxu1 %v835_v58 }
  0xb1   : > { %1068 = vmatmul.mubr.bf16.gmra.mrb[12].mxu0 %v835_v58  ;;  %1357 = vmatpush1.bf16.msra.mxu1 %v945_v62  ;;  %v979_v58 = vld [vmem:[#allocation2 + $0x3e0] sm:$0xff]  ;;  %v770_v62 = vld [vmem:[%s2063_s30 + $0x58] sm:$0xff] }
  0xb2   : > { %1131 = vmatpush1.bf16.msra.mxu0 %v943_v59  ;;  %1358 = vmatprep.subr.bf16.mxu1 %v950_v9  ;;  %v981_v59 = vld [vmem:[#allocation2 + $0x3f0] sm:$0xff]  ;;  %v825_v9 = vpack.c.bf16 %v765_v8, %v761_v56 }
  0xb3   : > { %1132 = vmatprep.subr.bf16.mxu0 %v948_v63  ;;  %1077 = vmatprep.mubr.bf16.mxu0 %v840_v60  ;;  %v774_v63 = vld [vmem:[%s2063_s30 + $0x78] sm:$0xff] }
  0xb4   : > { %1303 = vmatprep.mubr.bf16.mxu1 %v840_v60  ;;  %v830_v60 = vpack.c.bf16 %v774_v63, %v770_v62 }
  0xb5   : > { %1359 = vmatpush1.bf16.msra.mxu1 %v949_v4  ;;  %v782_v4 = vld [vmem:[%s2063_s30 + $0xb8] sm:$0xff] }
  0xb6   : > { %1133 = vmatpush1.bf16.msra.mxu0 %v947_v3  ;;  %1360 = vmatprep.subr.bf16.mxu1 %v954_v61  ;;  %v778_v3 = vld [vmem:[%s2063_s30 + $0x98] sm:$0xff] }
  0xb7   : > { %1134 = vmatprep.subr.bf16.mxu0 %v952_v7  ;;  %v829_v7 = vpack.c.bf16 %v773_v2, %v769_v0  ;;  %v834_v61 = vpack.c.bf16 %v782_v4, %v778_v3 }
  0xb8   : > { %1304 = vmatmul.mubr.bf16.gmra.mrb[16].mxu1 %v839_v11 }
  0xb9   : > { %1078 = vmatmul.mubr.bf16.gmra.mrb[16].mxu0 %v839_v11  ;;  %1361 = vmatpush1.bf16.msra.mxu1 %v953_v24  ;;  %v777_v11 = vld [vmem:[%s2063_s30 + $0x90] sm:$0xff] }
  0xba   : > { %1135 = vmatpush1.bf16.msra.mxu0 %v951_v10  ;;  %1362 = vmatprep.subr.bf16.mxu1 %v958_v12  ;;  %v790_v10 = vld [vmem:[%s2063_s30 + $0xf8] sm:$0xff]  ;;  %v833_v24 = vpack.c.bf16 %v781_v15, %v777_v11  ;;  %v785_v12 = vld [vmem:[%s2063_s30 + $0xd0] sm:$0xff] }
  0xbb   : > { %1136 = vmatprep.subr.bf16.mxu0 %v956_v25  ;;  %1087 = vmatprep.mubr.bf16.mxu0 %v844_v13  ;;  %v838_v25 = vpack.c.bf16 %v790_v10, %v786_v20 }
  0xbc   : > { %1313 = vmatprep.mubr.bf16.mxu1 %v844_v13  ;;  %v789_v13 = vld [vmem:[%s2063_s30 + $0xf0] sm:$0xff] }
  0xbd   : > { %1363 = vmatpush1.bf16.msra.mxu1 %v957_v17  ;;  %v842_v17 = vpack.c.bf16 %v798_v1, %v794_v14 }
  0xbe   : > { %1137 = vmatpush1.bf16.msra.mxu0 %v955_v5  ;;  %1364 = vmatprep.subr.bf16.mxu1 %v962_v19  ;;  %v837_v5 = vpack.c.bf16 %v789_v13, %v785_v12  ;;  %v797_v19 = vld [vmem:[%s2063_s30 + $0x130] sm:$0xff] }
  0xbf   : > { %1138 = vmatprep.subr.bf16.mxu0 %v960_v18  ;;  %v793_v18 = vld [vmem:[%s2063_s30 + $0x110] sm:$0xff] }
  0xc0   : > { %1314 = vmatmul.mubr.bf16.gmra.mrb[20].mxu1 %v843_v21  ;;  %v841_v6 = vpack.c.bf16 %v797_v19, %v793_v18 }
  0xc1   : > { %1088 = vmatmul.mubr.bf16.gmra.mrb[20].mxu0 %v843_v21  ;;  %1365 = vmatpush1.bf16.msra.mxu1 %v961_v26  ;;  %v802_v21 = vld [vmem:[%s2063_s30 + $0x158] sm:$0xff]  ;;  %v801_v26 = vld [vmem:[%s2063_s30 + $0x150] sm:$0xff] }
  0xc2   : > { %1139 = vmatpush1.bf16.msra.mxu0 %v959_v23  ;;  %1366 = vmatprep.subr.bf16.mxu1 %v966_v16  ;;  %v846_v23 = vpack.c.bf16 %v806_v22, %v802_v21  ;;  %v810_v16 = vld [vmem:[%s2063_s30 + $0x198] sm:$0xff] }
  0xc3   : > { %1140 = vmatprep.subr.bf16.mxu0 %v964_v27  ;;  %1097 = vmatprep.mubr.bf16.mxu0 %v848_v29  ;;  %v805_v27 = vld [vmem:[%s2063_s30 + $0x170] sm:$0xff] }
  0xc4   : > { %1323 = vmatprep.mubr.bf16.mxu1 %v848_v29  ;;  %v814_v29 = vld [vmem:[%s2063_s30 + $0x1b8] sm:$0xff]  ;;  %v845_v28 = vpack.c.bf16 %v805_v27, %v801_v26 }
  0xc5   : > { %1367 = vmatpush1.bf16.msra.mxu1 %v965_v32  ;;  %v850_v30 = vpack.c.bf16 %v814_v29, %v810_v16  ;;  %v813_v32 = vld [vmem:[%s2063_s30 + $0x1b0] sm:$0xff] }
  0xc6   : > { %1141 = vmatpush1.bf16.msra.mxu0 %v963_v31  ;;  %1368 = vmatprep.subr.bf16.mxu1 %v970_v33  ;;  %v809_v31 = vld [vmem:[%s2063_s30 + $0x190] sm:$0xff]  ;;  %v822_v33 = vld [vmem:[%s2063_s30 + $0x1f8] sm:$0xff] }
  0xc7   : > { %1142 = vmatprep.subr.bf16.mxu0 %v968_v35  ;;  %v818_v35 = vld [vmem:[%s2063_s30 + $0x1d8] sm:$0xff] }
  0xc8   : > { %1324 = vmatmul.mubr.bf16.gmra.mrb[24].mxu1 %v847_v34  ;;  %v854_v36 = vpack.c.bf16 %v822_v33, %v818_v35 }
  0xc9   : > { %1098 = vmatmul.mubr.bf16.gmra.mrb[24].mxu0 %v847_v34  ;;  %1369 = vmatpush1.bf16.msra.mxu1 %v969_v38  ;;  %v849_v34 = vpack.c.bf16 %v813_v32, %v809_v31 }
  0xca   : > { %1143 = vmatpush1.bf16.msra.mxu0 %v967_v39  ;;  %1370 = vmatprep.subr.bf16.mxu1 %v974_v40  ;;  %v821_v39 = vld [vmem:[%s2063_s30 + $0x1f0] sm:$0xff]  ;;  %s1719_s30 = sshll.u32 %s2029_s16, 13 }
  0xcb   : > { %1144 = vmatprep.subr.bf16.mxu0 %v972_v42  ;;  %1107 = vmatprep.mubr.bf16.mxu0 %v852_v41  ;;  %v853_v38 = vpack.c.bf16 %v821_v39, %v817_v37  ;;  %v985_v42 = vlaneseq  ;;  %s2628_s26 = scalar_lea.hbm %s2686_s3, %s1719_s30 }
  0xcc   : > { %1333 = vmatprep.mubr.bf16.mxu1 %v852_v41 }
  0xcd   : > { %1371 = vmatpush1.bf16.msra.mxu1 %v973_v43  ;;  %v986_v40 = vshrl.u32 %v985_v42, 7 }
  0xce   : > { %1145 = vmatpush1.bf16.msra.mxu0 %v971_v46  ;;  %1372 = vmatprep.subr.bf16.mxu1 %v978_v48 }
  0xcf   : > { %1146 = vmatprep.subr.bf16.mxu0 %v976_v47  ;;  %v987_v41 = vsub.s32 0, %v986_v40  ;;  %v995_v44 = vsub.s32 2, %v986_v40  ;;  %v991_v46 = vsub.s32 1, %v986_v40  ;;  %v999_v43 = vsub.s32 3, %v986_v40 }
  0xd0   : > { %1334 = vmatmul.mubr.bf16.gmra.mrb[28].mxu1 %v851_v49 }
  0xd1   : > { %1108 = vmatmul.mubr.bf16.gmra.mrb[28].mxu0 %v851_v49  ;;  %1373 = vmatpush1.bf16.msra.mxu1 %v977_v53  ;;  %v2495_v47 = vrot.slane %v983_v45, %v987_v41  ;;  %v2497_v48 = vrot.slane %v983_v45, %v995_v44  ;;  %v2499_v49 = vrot.slane %v983_v45, %v991_v46 }
  0xd2   : > { %1147 = vmatpush1.bf16.msra.mxu0 %v975_v52  ;;  %1374 = vmatprep.subr.bf16.mxu1 %v982_v55  ;;  %v2501_v50 = vrot.slane %v983_v45, %v999_v43 }
  0xd3   : > { %1148 = vmatprep.subr.bf16.mxu0 %v980_v54  ;;  %1150 = vmatprep.mubr.bf16.mxu0 %v826_v57 }
  0xd4   : > { %1376 = vmatprep.mubr.bf16.mxu1 %v826_v57 }
  0xd5   : > { %1375 = vmatpush1.bf16.msra.mxu1 %v981_v59 }
  0xd6   : > { %1149 = vmatpush1.bf16.msra.mxu0 %v979_v58 }
  0xd8   : > { %1377 = vmatmul.mubr.bf16.vlgmr.msra.gmra.mrb[0].mxu1 %v825_v9 }
  0xd9   : > { %1151 = vmatmul.mubr.bf16.vlgmr.msra.gmra.mrb[0].mxu0 %v825_v9  ;;  %1386 = vmatprep.mubr.bf16.mxu1 %v830_v60 }
  0xda   : > { %1160 = vmatprep.mubr.bf16.mxu0 %v830_v60 }
  0xe0   : > { %1387 = vmatmul.mubr.bf16.gmra.mrb[4].mxu1 %v829_v7 }
  0xe1   : > { %1161 = vmatmul.mubr.bf16.gmra.mrb[4].mxu0 %v829_v7  ;;  %1396 = vmatprep.mubr.bf16.mxu1 %v834_v61 }
  0xe2   : > { %1170 = vmatprep.mubr.bf16.mxu0 %v834_v61 }
  0xe8   : > { %1397 = vmatmul.mubr.bf16.gmra.mrb[8].mxu1 %v833_v24 }
  0xe9   : > { %1171 = vmatmul.mubr.bf16.gmra.mrb[8].mxu0 %v833_v24  ;;  %1406 = vmatprep.mubr.bf16.mxu1 %v838_v25 }
  0xea   : > { %1180 = vmatprep.mubr.bf16.mxu0 %v838_v25 }
  0xf0   : > { %1407 = vmatmul.mubr.bf16.gmra.mrb[12].mxu1 %v837_v5 }
  0xf1   : > { %1181 = vmatmul.mubr.bf16.gmra.mrb[12].mxu0 %v837_v5  ;;  %1416 = vmatprep.mubr.bf16.mxu1 %v842_v17 }
  0xf2   : > { %1190 = vmatprep.mubr.bf16.mxu0 %v842_v17 }
  0xf8   : > { %1417 = vmatmul.mubr.bf16.gmra.mrb[16].mxu1 %v841_v6 }
  0xf9   : > { %1191 = vmatmul.mubr.bf16.gmra.mrb[16].mxu0 %v841_v6  ;;  %1426 = vmatprep.mubr.bf16.mxu1 %v846_v23 }
  0xfa   : > { %1200 = vmatprep.mubr.bf16.mxu0 %v846_v23 }
 0x100   : > { %1427 = vmatmul.mubr.bf16.gmra.mrb[20].mxu1 %v845_v28 }
 0x101   : > { %1201 = vmatmul.mubr.bf16.gmra.mrb[20].mxu0 %v845_v28  ;;  %1436 = vmatprep.mubr.bf16.mxu1 %v850_v30 }
 0x102   : > { %1210 = vmatprep.mubr.bf16.mxu0 %v850_v30 }
 0x108   : > { %1437 = vmatmul.mubr.bf16.gmra.mrb[24].mxu1 %v849_v34 }
 0x109   : > { %1211 = vmatmul.mubr.bf16.gmra.mrb[24].mxu0 %v849_v34  ;;  %1446 = vmatprep.mubr.bf16.mxu1 %v854_v36 }
 0x10a   : > { %1220 = vmatprep.mubr.bf16.mxu0 %v854_v36 }
 0x110   : > { %1447 = vmatmul.mubr.bf16.gmra.mrb[28].mxu1 %v853_v38 }
 0x111   : > { %1221 = vmatmul.mubr.bf16.gmra.mrb[28].mxu0 %v853_v38 }
 0x1ab   : > { %v1378_v52 = vpop.f32.mrb[0].mxu1 }
 0x1ac   : > { %v1152_v51 = vpop.f32.mrb[0].mxu0  ;;  %v1752_v54 = vadd.f32 %v1378_v52, %v2497_v48  ;;  %v1380_v57 = vpop.f32.mrb[1].mxu1 }
 0x1ad   : > { %v1720_v53 = vadd.f32 %v1152_v51, %v2495_v47  ;;  %v1154_v55 = vpop.f32.mrb[1].mxu0  ;;  %v1753_v56 = vadd.f32 %v1380_v57, %v2501_v50  ;;  %v1382_v59 = vpop.f32.mrb[2].mxu1 }
 0x1ae   : > { %v1721_v58 = vadd.f32 %v1154_v55, %v2499_v49  ;;  %v1156_v8 = vpop.f32.mrb[2].mxu0  ;;  %1459 = vst [vmem:[%s2065_s4 + $0x10] sm:$0xff] %v1752_v54  ;;  %v1754_v63 = vadd.f32 %v1382_v59, %v2497_v48  ;;  %v1384_v60 = vpop.f32.mrb[3].mxu1 }
 0x1af   : > { %1457 = vst [vmem:[%s2065_s4] sm:$0xff] %v1720_v53  ;;  %v1722_v62 = vadd.f32 %v1156_v8, %v2495_v47  ;;  %v1158_v9 = vpop.f32.mrb[3].mxu0  ;;  %1460 = vst [vmem:[%s2065_s4 + $0x18] sm:$0xff] %v1753_v56  ;;  %v1755_v2 = vadd.f32 %v1384_v60, %v2501_v50 }
 0x1b0   : > { %1458 = vst [vmem:[%s2065_s4 + $0x8] sm:$0xff] %v1721_v58  ;;  %v1723_v0 = vadd.f32 %v1158_v9, %v2499_v49  ;;  %1463 = vst [vmem:[%s2065_s4 + $0x30] sm:$0xff] %v1754_v63 }
 0x1b1   : > { %1461 = vst [vmem:[%s2065_s4 + $0x20] sm:$0xff] %v1722_v62  ;;  %1464 = vst [vmem:[%s2065_s4 + $0x38] sm:$0xff] %v1755_v2 }
 0x1b2   : > { %1462 = vst [vmem:[%s2065_s4 + $0x28] sm:$0xff] %v1723_v0 }
 0x1b3   : > { %v1388_v4 = vpop.f32.mrb[4].mxu1 }
 0x1b4   : > { %v1162_v3 = vpop.f32.mrb[4].mxu0  ;;  %v1756_v61 = vadd.f32 %v1388_v4, %v2497_v48  ;;  %v1390_v15 = vpop.f32.mrb[5].mxu1 }
 0x1b5   : > { %v1724_v7 = vadd.f32 %v1162_v3, %v2495_v47  ;;  %v1164_v11 = vpop.f32.mrb[5].mxu0  ;;  %v1757_v10 = vadd.f32 %v1390_v15, %v2501_v50  ;;  %v1392_v25 = vpop.f32.mrb[6].mxu1 }
 0x1b6   : > { %v1725_v20 = vadd.f32 %v1164_v11, %v2499_v49  ;;  %v1166_v24 = vpop.f32.mrb[6].mxu0  ;;  %1467 = vst [vmem:[%s2065_s4 + $0x50] sm:$0xff] %v1756_v61  ;;  %v1758_v13 = vadd.f32 %v1392_v25, %v2497_v48  ;;  %v1394_v1 = vpop.f32.mrb[7].mxu1 }
 0x1b7   : > { %1465 = vst [vmem:[%s2065_s4 + $0x40] sm:$0xff] %v1724_v7  ;;  %v1726_v12 = vadd.f32 %v1166_v24, %v2495_v47  ;;  %v1168_v14 = vpop.f32.mrb[7].mxu0  ;;  %1468 = vst [vmem:[%s2065_s4 + $0x58] sm:$0xff] %v1757_v10  ;;  %v1759_v17 = vadd.f32 %v1394_v1, %v2501_v50 }
 0x1b8   : > { %1466 = vst [vmem:[%s2065_s4 + $0x48] sm:$0xff] %v1725_v20  ;;  %v1727_v5 = vadd.f32 %v1168_v14, %v2499_v49  ;;  %1471 = vst [vmem:[%s2065_s4 + $0x70] sm:$0xff] %v1758_v13 }
 0x1b9   : > { %1469 = vst [vmem:[%s2065_s4 + $0x60] sm:$0xff] %v1726_v12  ;;  %1472 = vst [vmem:[%s2065_s4 + $0x78] sm:$0xff] %v1759_v17 }
 0x1ba   : > { %1470 = vst [vmem:[%s2065_s4 + $0x68] sm:$0xff] %v1727_v5 }
 0x1bb   : > { %v1398_v19 = vpop.f32.mrb[8].mxu1 }
 0x1bc   : > { %v1172_v18 = vpop.f32.mrb[8].mxu0  ;;  %v1760_v22 = vadd.f32 %v1398_v19, %v2497_v48  ;;  %v1400_v23 = vpop.f32.mrb[9].mxu1 }
 0x1bd   : > { %v1728_v21 = vadd.f32 %v1172_v18, %v2495_v47  ;;  %v1174_v6 = vpop.f32.mrb[9].mxu0  ;;  %v1761_v27 = vadd.f32 %v1400_v23, %v2501_v50  ;;  %v1402_v29 = vpop.f32.mrb[10].mxu1 }
 0x1be   : > { %v1729_v26 = vadd.f32 %v1174_v6, %v2499_v49  ;;  %v1176_v16 = vpop.f32.mrb[10].mxu0  ;;  %1475 = vst [vmem:[%s2065_s4 + $0x90] sm:$0xff] %v1760_v22  ;;  %v1762_v30 = vadd.f32 %v1402_v29, %v2497_v48  ;;  %v1404_v32 = vpop.f32.mrb[11].mxu1 }
 0x1bf   : > { %1473 = vst [vmem:[%s2065_s4 + $0x80] sm:$0xff] %v1728_v21  ;;  %v1730_v28 = vadd.f32 %v1176_v16, %v2495_v47  ;;  %v1178_v31 = vpop.f32.mrb[11].mxu0  ;;  %1476 = vst [vmem:[%s2065_s4 + $0x98] sm:$0xff] %v1761_v27  ;;  %v1763_v33 = vadd.f32 %v1404_v32, %v2501_v50 }
 0x1c0   : > { %1474 = vst [vmem:[%s2065_s4 + $0x88] sm:$0xff] %v1729_v26  ;;  %v1731_v35 = vadd.f32 %v1178_v31, %v2499_v49  ;;  %1479 = vst [vmem:[%s2065_s4 + $0xb0] sm:$0xff] %v1762_v30 }
 0x1c1   : > { %1477 = vst [vmem:[%s2065_s4 + $0xa0] sm:$0xff] %v1730_v28  ;;  %1480 = vst [vmem:[%s2065_s4 + $0xb8] sm:$0xff] %v1763_v33 }
 0x1c2   : > { %1478 = vst [vmem:[%s2065_s4 + $0xa8] sm:$0xff] %v1731_v35 }
 0x1c3   : > { %v1408_v36 = vpop.f32.mrb[12].mxu1 }
 0x1c4   : > { %v1182_v34 = vpop.f32.mrb[12].mxu0  ;;  %v1764_v39 = vadd.f32 %v1408_v36, %v2497_v48  ;;  %v1410_v42 = vpop.f32.mrb[13].mxu1 }
 0x1c5   : > { %v1732_v37 = vadd.f32 %v1182_v34, %v2495_v47  ;;  %v1184_v38 = vpop.f32.mrb[13].mxu0  ;;  %v1765_v41 = vadd.f32 %v1410_v42, %v2501_v50  ;;  %v1412_v45 = vpop.f32.mrb[14].mxu1 }
 0x1c6   : > { %v1733_v40 = vadd.f32 %v1184_v38, %v2499_v49  ;;  %v1186_v44 = vpop.f32.mrb[14].mxu0  ;;  %1483 = vst [vmem:[%s2065_s4 + $0xd0] sm:$0xff] %v1764_v39  ;;  %v1766_v43 = vadd.f32 %v1412_v45, %v2497_v48  ;;  %v1414_v52 = vpop.f32.mrb[15].mxu1 }
 0x1c7   : > { %1481 = vst [vmem:[%s2065_s4 + $0xc0] sm:$0xff] %v1732_v37  ;;  %v1734_v46 = vadd.f32 %v1186_v44, %v2495_v47  ;;  %v1188_v51 = vpop.f32.mrb[15].mxu0  ;;  %1484 = vst [vmem:[%s2065_s4 + $0xd8] sm:$0xff] %v1765_v41  ;;  %v1767_v54 = vadd.f32 %v1414_v52, %v2501_v50 }
 0x1c8   : > { %1482 = vst [vmem:[%s2065_s4 + $0xc8] sm:$0xff] %v1733_v40  ;;  %v1735_v53 = vadd.f32 %v1188_v51, %v2499_v49  ;;  %1487 = vst [vmem:[%s2065_s4 + $0xf0] sm:$0xff] %v1766_v43 }
 0x1c9   : > { %1485 = vst [vmem:[%s2065_s4 + $0xe0] sm:$0xff] %v1734_v46  ;;  %1488 = vst [vmem:[%s2065_s4 + $0xf8] sm:$0xff] %v1767_v54 }
 0x1ca   : > { %1486 = vst [vmem:[%s2065_s4 + $0xe8] sm:$0xff] %v1735_v53 }
 0x1cb   : > { %v1418_v57 = vpop.f32.mrb[16].mxu1 }
 0x1cc   : > { %v1192_v55 = vpop.f32.mrb[16].mxu0  ;;  %v1768_v56 = vadd.f32 %v1418_v57, %v2497_v48  ;;  %v1420_v59 = vpop.f32.mrb[17].mxu1 }
 0x1cd   : > { %v1736_v58 = vadd.f32 %v1192_v55, %v2495_v47  ;;  %v1194_v8 = vpop.f32.mrb[17].mxu0  ;;  %v1769_v63 = vadd.f32 %v1420_v59, %v2501_v50  ;;  %v1422_v60 = vpop.f32.mrb[18].mxu1 }
 0x1ce   : > { %v1737_v62 = vadd.f32 %v1194_v8, %v2499_v49  ;;  %v1196_v9 = vpop.f32.mrb[18].mxu0  ;;  %1491 = vst [vmem:[%s2065_s4 + $0x110] sm:$0xff] %v1768_v56  ;;  %v1770_v2 = vadd.f32 %v1422_v60, %v2497_v48  ;;  %v1424_v4 = vpop.f32.mrb[19].mxu1 }
 0x1cf   : > { %1489 = vst [vmem:[%s2065_s4 + $0x100] sm:$0xff] %v1736_v58  ;;  %v1738_v0 = vadd.f32 %v1196_v9, %v2495_v47  ;;  %v1198_v3 = vpop.f32.mrb[19].mxu0  ;;  %1492 = vst [vmem:[%s2065_s4 + $0x118] sm:$0xff] %v1769_v63  ;;  %v1771_v61 = vadd.f32 %v1424_v4, %v2501_v50 }
 0x1d0   : > { %1490 = vst [vmem:[%s2065_s4 + $0x108] sm:$0xff] %v1737_v62  ;;  %v1739_v7 = vadd.f32 %v1198_v3, %v2499_v49  ;;  %1495 = vst [vmem:[%s2065_s4 + $0x130] sm:$0xff] %v1770_v2 }
 0x1d1   : > { %1493 = vst [vmem:[%s2065_s4 + $0x120] sm:$0xff] %v1738_v0  ;;  %1496 = vst [vmem:[%s2065_s4 + $0x138] sm:$0xff] %v1771_v61 }
 0x1d2   : > { %1494 = vst [vmem:[%s2065_s4 + $0x128] sm:$0xff] %v1739_v7 }
 0x1d3   : > { %v1428_v15 = vpop.f32.mrb[20].mxu1 }
 0x1d4   : > { %v1202_v11 = vpop.f32.mrb[20].mxu0  ;;  %v1772_v10 = vadd.f32 %v1428_v15, %v2497_v48  ;;  %v1430_v25 = vpop.f32.mrb[21].mxu1 }
 0x1d5   : > { %v1740_v20 = vadd.f32 %v1202_v11, %v2495_v47  ;;  %v1204_v24 = vpop.f32.mrb[21].mxu0  ;;  %v1773_v13 = vadd.f32 %v1430_v25, %v2501_v50  ;;  %v1432_v1 = vpop.f32.mrb[22].mxu1 }
 0x1d6   : > { %v1741_v12 = vadd.f32 %v1204_v24, %v2499_v49  ;;  %v1206_v14 = vpop.f32.mrb[22].mxu0  ;;  %1499 = vst [vmem:[%s2065_s4 + $0x150] sm:$0xff] %v1772_v10  ;;  %v1774_v17 = vadd.f32 %v1432_v1, %v2497_v48  ;;  %v1434_v19 = vpop.f32.mrb[23].mxu1 }
 0x1d7   : > { %1497 = vst [vmem:[%s2065_s4 + $0x140] sm:$0xff] %v1740_v20  ;;  %v1742_v5 = vadd.f32 %v1206_v14, %v2495_v47  ;;  %v1208_v18 = vpop.f32.mrb[23].mxu0  ;;  %1500 = vst [vmem:[%s2065_s4 + $0x158] sm:$0xff] %v1773_v13  ;;  %v1775_v22 = vadd.f32 %v1434_v19, %v2501_v50 }
 0x1d8   : > { %1498 = vst [vmem:[%s2065_s4 + $0x148] sm:$0xff] %v1741_v12  ;;  %v1743_v21 = vadd.f32 %v1208_v18, %v2499_v49  ;;  %1503 = vst [vmem:[%s2065_s4 + $0x170] sm:$0xff] %v1774_v17 }
 0x1d9   : > { %1501 = vst [vmem:[%s2065_s4 + $0x160] sm:$0xff] %v1742_v5  ;;  %1504 = vst [vmem:[%s2065_s4 + $0x178] sm:$0xff] %v1775_v22 }
 0x1da   : > { %1502 = vst [vmem:[%s2065_s4 + $0x168] sm:$0xff] %v1743_v21 }
 0x1db   : > { %v1438_v23 = vpop.f32.mrb[24].mxu1 }
 0x1dc   : > { %v1212_v6 = vpop.f32.mrb[24].mxu0  ;;  %v1776_v27 = vadd.f32 %v1438_v23, %v2497_v48  ;;  %v1440_v29 = vpop.f32.mrb[25].mxu1 }
 0x1dd   : > { %v1744_v26 = vadd.f32 %v1212_v6, %v2495_v47  ;;  %v1214_v16 = vpop.f32.mrb[25].mxu0  ;;  %v1777_v30 = vadd.f32 %v1440_v29, %v2501_v50  ;;  %v1442_v32 = vpop.f32.mrb[26].mxu1 }
 0x1de   : > { %v1745_v28 = vadd.f32 %v1214_v16, %v2499_v49  ;;  %v1216_v31 = vpop.f32.mrb[26].mxu0  ;;  %1507 = vst [vmem:[%s2065_s4 + $0x190] sm:$0xff] %v1776_v27  ;;  %v1778_v33 = vadd.f32 %v1442_v32, %v2497_v48  ;;  %v1444_v36 = vpop.f32.mrb[27].mxu1 }
 0x1df   : > { %1505 = vst [vmem:[%s2065_s4 + $0x180] sm:$0xff] %v1744_v26  ;;  %v1746_v35 = vadd.f32 %v1216_v31, %v2495_v47  ;;  %v1218_v34 = vpop.f32.mrb[27].mxu0  ;;  %1508 = vst [vmem:[%s2065_s4 + $0x198] sm:$0xff] %v1777_v30  ;;  %v1779_v39 = vadd.f32 %v1444_v36, %v2501_v50 }
 0x1e0   : > { %1506 = vst [vmem:[%s2065_s4 + $0x188] sm:$0xff] %v1745_v28  ;;  %v1747_v37 = vadd.f32 %v1218_v34, %v2499_v49  ;;  %1511 = vst [vmem:[%s2065_s4 + $0x1b0] sm:$0xff] %v1778_v33 }
 0x1e1   : > { %1509 = vst [vmem:[%s2065_s4 + $0x1a0] sm:$0xff] %v1746_v35  ;;  %1512 = vst [vmem:[%s2065_s4 + $0x1b8] sm:$0xff] %v1779_v39 }
 0x1e2   : > { %1510 = vst [vmem:[%s2065_s4 + $0x1a8] sm:$0xff] %v1747_v37 }
 0x1e3   : > { %v1448_v42 = vpop.f32.mrb[28].mxu1 }
 0x1e4   : > { %v1222_v38 = vpop.f32.mrb[28].mxu0  ;;  %v1780_v41 = vadd.f32 %v1448_v42, %v2497_v48  ;;  %v1450_v45 = vpop.f32.mrb[29].mxu1 }
 0x1e5   : > { %v1748_v40 = vadd.f32 %v1222_v38, %v2495_v47  ;;  %v1224_v44 = vpop.f32.mrb[29].mxu0  ;;  %v1781_v43 = vadd.f32 %v1450_v45, %v2501_v50  ;;  %v1452_v52 = vpop.f32.mrb[30].mxu1 }
 0x1e6   : > { %v1749_v46 = vadd.f32 %v1224_v44, %v2499_v49  ;;  %v1226_v51 = vpop.f32.mrb[30].mxu0  ;;  %1515 = vst [vmem:[%s2065_s4 + $0x1d0] sm:$0xff] %v1780_v41  ;;  %v1782_v54 = vadd.f32 %v1452_v52, %v2497_v48  ;;  %v1454_v57 = vpop.f32.mrb[31].mxu1 }
 0x1e7   : > { %1513 = vst [vmem:[%s2065_s4 + $0x1c0] sm:$0xff] %v1748_v40  ;;  %v1750_v53 = vadd.f32 %v1226_v51, %v2495_v47  ;;  %v1228_v55 = vpop.f32.mrb[31].mxu0  ;;  %1516 = vst [vmem:[%s2065_s4 + $0x1d8] sm:$0xff] %v1781_v43  ;;  %v1783_v47 = vadd.f32 %v1454_v57, %v2501_v50 }
 0x1e8   : > { %1514 = vst [vmem:[%s2065_s4 + $0x1c8] sm:$0xff] %v1749_v46  ;;  %v1751_v58 = vadd.f32 %v1228_v55, %v2499_v49  ;;  %1519 = vst [vmem:[%s2065_s4 + $0x1f0] sm:$0xff] %v1782_v54 }
 0x1e9   : > { %1517 = vst [vmem:[%s2065_s4 + $0x1e0] sm:$0xff] %v1750_v53  ;;  %1520 = vst [vmem:[%s2065_s4 + $0x1f8] sm:$0xff] %v1783_v47 }
 0x1ea   : > { %1518 = vst [vmem:[%s2065_s4 + $0x1e8] sm:$0xff] %v1751_v58 }
 0x1eb   : > { %1934 = shalt.err (!%p1931_p4)
}
 0x1ec   : > { %s1935_s24 = scalar_lea.hbm %s2628_s26, 8192  ;;  %s1939_s8 = scalar_lea.hbm %s2686_s3, 16384 }
 0x1ed   : > { %p1936_p7 = scmp.ne.s32.totalorder %s2628_s26, %s1935_s24  ;;  %p1940_p10 = scmp.lt.u32.totalorder %s2628_s26, %s2686_s3 }
 0x1ee   : > { %p1941_p11 = scmp.lt.u32.totalorder %s1939_s8, %s1935_s24  ;;  %p1943_p13 = scmp.lt.u32.totalorder %s1935_s24, %s2628_s26 }
 0x1ef   : > { %p1937_p8 = pnand %p1936_p7, %p2046_p5 }
 0x1f0   : > { %p1942_p12 = por %p1941_p11, %p1940_p10 }
 0x1f1   : > { %p1938_p9 = pneg %p1937_p8 }
 0x1f2   : > { %p1944_p0 = por %p1943_p13, %p1942_p12 }
 0x1f4   : > { %p1945_p1 = pnand %p1944_p0, %p1938_p9 }
 0x1f6   : > { %1948 = shalt.err (!%p1945_p1)
}
 0x1f7   : > { %s1986_s11 = smov 512   ;;  %s1987_s17 = smov 32  }
 0x1f8   : > { %1848 = dma.vmem_to_hbm [thread:$0]  (%p2046_p5), %s2630_s20, 8192, %s2628_s26, %s2642_s27, %s1986_s11, %s1986_s11, %s1987_s17  }
 0x1f9 PF: > { %p1854_p2 = scmp.ge.s32.totalorder %s1983_s15, 2  ;;  %s1551_s19 = sand.u32 1, %s1971_s12  }
 0x1fa   : > { %s1552_s30 = scalar_lea.sflag [#allocation4], %s1551_s19 }
 0x1fb   : > { %p1851_p3 = pnand %p1854_p2, %p2050_p6 }
 0x1fd   : > { %1966 = dma.done.wait (!%p1851_p3), %s1552_s30, 8192  }
 0x1fe   : > { %1968 = vsyncadd (!%p1851_p3), %s1552_s30, 4294959104  ;;  %p13_p4 = scmp.ge.s32.totalorder %s2033_s18, 4   ;;  %s2689_s12 = smov %s1975_s13 }
 0x1ff   : > { %s2690_s13 = smov %s1979_s14  ;;  %s2691_s14 = smov %s2044_s21 }
 0x200   : > { %s2692_s15 = smov %s2033_s18  ;;  %15 = sbr.rel (!%p13_p4) target bundleno = 3 (0x3), region = 74 }
 0x207   :  { %1557 = vsyncpa [#allocation4], 1 }
 0x208   :  { %1559 = vsyncpa [#allocation4 + $0x1], 1 }

</bundles_post_ra>
